<compile_context>
chip_gen: v5e
topology: v5e:2x2
jax: 0.10.0
libtpu: 0.0.40
codegen_flags: <defaults>
</compile_context>

<pallas_src>
import functools

import jax
import jax.numpy as jnp
from jax import lax
from jax.experimental import pallas as pl
from jax.experimental.pallas import tpu as pltpu

COMPUTE_DTYPE = jnp.float32   # jnp.bfloat16 recommended on v6e/v7x production
EPS = 1e-5
SLOPE = 0.01                  # nn.LeakyReLU() default negative_slope


# ----------------------------- Pallas kernels ------------------------------

def _gemm_bn_lrelu_kernel(p_ref, w_ref, g_ref, b_ref, o_ref, *, eps, slope):
    """out = LeakyReLU(BatchNorm(W @ P));  W:(Cout,CinKK)  P:(CinKK,M)."""
    y = jnp.dot(w_ref[...].astype(COMPUTE_DTYPE),
                p_ref[...].astype(COMPUTE_DTYPE),
                preferred_element_type=jnp.float32)            # (Cout, M)
    # Training-mode BatchNorm2d: per-channel (row) batch mean / biased var,
    # computed in one pass as lane reductions over the full M = B*Ho*Wo axis.
    mean = jnp.mean(y, axis=1, keepdims=True)
    mean_sq = jnp.mean(y * y, axis=1, keepdims=True)
    var = mean_sq - mean * mean
    scale = g_ref[...] * lax.rsqrt(var + eps)                  # (Cout, 1)
    shift = b_ref[...] - mean * scale                          # (Cout, 1)
    y = y * scale + shift
    # LeakyReLU with 0 < slope < 1:  max(y, slope*y)
    o_ref[...] = jnp.maximum(y, slope * y).astype(o_ref.dtype)


def _gemm_tanh_kernel(p_ref, w_ref, o_ref):
    y = jnp.dot(w_ref[...].astype(COMPUTE_DTYPE),
                p_ref[...].astype(COMPUTE_DTYPE),
                preferred_element_type=jnp.float32)
    o_ref[...] = jnp.tanh(y).astype(o_ref.dtype)


_VMEM = pl.BlockSpec(memory_space=pltpu.MemorySpace.VMEM)


def gemm_bn_lrelu(p, w, gamma, beta):
    Cout, M = w.shape[0], p.shape[1]
    return pl.pallas_call(
        functools.partial(_gemm_bn_lrelu_kernel, eps=EPS, slope=SLOPE),
        out_shape=jax.ShapeDtypeStruct((Cout, M), jnp.float32),
        in_specs=[_VMEM, _VMEM, _VMEM, _VMEM],
        out_specs=_VMEM,
    )(p, w, gamma, beta)


def gemm_tanh(p, w):
    Cout, M = w.shape[0], p.shape[1]
    return pl.pallas_call(
        _gemm_tanh_kernel,
        out_shape=jax.ShapeDtypeStruct((Cout, M), jnp.float32),
        in_specs=[_VMEM, _VMEM],
        out_specs=_VMEM,
    )(p, w)


# ------------------------------ JAX glue ------------------------------------

def _patches_cnhw(x_cnhw, K, stride, pad):
    """Transposed-conv receptive-field patches.

    x_cnhw: (Cin, B, H, W). Returns P:(Cin*K*K, B*Ho*Wo) and (B, Ho, Wo).
    Zero insertion (lhs_dilation) and the K-1-pad border are handled by a
    single conv_general_dilated_patches call; the "CNHW" output spec means
    the result is already channel-major, so only a free reshape follows.
    """
    p = K - 1 - pad
    pat = lax.conv_general_dilated_patches(
        x_cnhw, (K, K), (1, 1), [(p, p), (p, p)],
        lhs_dilation=(stride, stride),
        dimension_numbers=("CNHW", "OIHW", "CNHW"),
        precision=lax.Precision.HIGHEST)
    CKK, B, Ho, Wo = pat.shape
    return pat.reshape(CKK, B * Ho * Wo), (B, Ho, Wo)


def prepare_params(params):
    """One-time weight packing (hoisted out of the per-call forward):
    ConvTranspose2d weight (Cin,Cout,K,K) -> flipped conv GEMM matrix
    (Cout, Cin*K*K); BN gamma/beta -> (Cout, 1) columns."""
    def pack_w(w):
        Cin, Cout, K, _ = w.shape
        return jnp.flip(w, (2, 3)).transpose(1, 0, 2, 3).reshape(Cout, Cin * K * K)

    packed = {f"w{i}": pack_w(params[f"w{i}"]) for i in range(1, 5)}
    for i in range(1, 4):
        packed[f"g{i}"] = params[f"g{i}"].reshape(-1, 1)
        packed[f"b{i}"] = params[f"b{i}"].reshape(-1, 1)
    return packed


@jax.jit
def generator_forward(x, pp):
    """x: (B, nz, 1, 1) NCHW latent.  Returns (B, nc, 32, 32) NCHW."""
    h = jnp.transpose(x, (1, 0, 2, 3))                        # CNHW
    # Layer 1: ConvT(nz, ngf*4, 4, 1, 0) + BN + LeakyReLU     -> 4x4
    p, (B, Ho, Wo) = _patches_cnhw(h, 4, 1, 0)
    h = gemm_bn_lrelu(p, pp["w1"], pp["g1"], pp["b1"]).reshape(-1, B, Ho, Wo)
    # Layer 2: ConvT(ngf*4, ngf*2, 4, 2, 1) + BN + LeakyReLU  -> 8x8
    p, (B, Ho, Wo) = _patches_cnhw(h, 4, 2, 1)
    h = gemm_bn_lrelu(p, pp["w2"], pp["g2"], pp["b2"]).reshape(-1, B, Ho, Wo)
    # Layer 3: ConvT(ngf*2, ngf, 4, 2, 1) + BN + LeakyReLU    -> 16x16
    p, (B, Ho, Wo) = _patches_cnhw(h, 4, 2, 1)
    h = gemm_bn_lrelu(p, pp["w3"], pp["g3"], pp["b3"]).reshape(-1, B, Ho, Wo)
    # Layer 4: ConvT(ngf, nc, 4, 2, 1) + Tanh (fused)         -> 32x32
    p, (B, Ho, Wo) = _patches_cnhw(h, 4, 2, 1)
    out = gemm_tanh(p, pp["w4"]).reshape(-1, B, Ho, Wo)       # (nc, B, 32, 32)
    return jnp.transpose(out, (1, 0, 2, 3))                   # NCHW output


# ----------------------- pure-JAX reference (check) -------------------------

def ref_forward(x, params):
    def ct(h, wt, stride, pad):
        K = wt.shape[2]
        wconv = jnp.flip(wt, axis=(2, 3)).transpose(1, 0, 2, 3)
        p = K - 1 - pad
        return lax.conv_general_dilated(
            h, wconv, window_strides=(1, 1), padding=[(p, p), (p, p)],
            lhs_dilation=(stride, stride),
            dimension_numbers=("NCHW", "OIHW", "NCHW"),
            precision=lax.Precision.HIGHEST)

    def bn_lr(h, g, b):
        mean = jnp.mean(h, axis=(0, 2, 3), keepdims=True)
        var = jnp.mean((h - mean) ** 2, axis=(0, 2, 3), keepdims=True)
        y = (h - mean) * lax.rsqrt(var + EPS)
        y = y * g.reshape(1, -1, 1, 1) + b.reshape(1, -1, 1, 1)
        return jnp.where(y >= 0, y, SLOPE * y)

    h = bn_lr(ct(x, params["w1"], 1, 0), params["g1"], params["b1"])
    h = bn_lr(ct(h, params["w2"], 2, 1), params["g2"], params["b2"])
    h = bn_lr(ct(h, params["w3"], 2, 1), params["g3"], params["b3"])
    return jnp.tanh(ct(h, params["w4"], 2, 1))


# --------------------------------- main --------------------------------------

if __name__ == "__main__":
    nc, nz, ngf, B = 3, 16, 8, 2
    ks = jax.random.split(jax.random.PRNGKey(0), 10)
    params = {
        "w1": 0.05 * jax.random.normal(ks[0], (nz, ngf * 4, 4, 4), jnp.float32),
        "w2": 0.05 * jax.random.normal(ks[1], (ngf * 4, ngf * 2, 4, 4), jnp.float32),
        "w3": 0.05 * jax.random.normal(ks[2], (ngf * 2, ngf, 4, 4), jnp.float32),
        "w4": 0.05 * jax.random.normal(ks[3], (ngf, nc, 4, 4), jnp.float32),
        "g1": 1.0 + 0.1 * jax.random.normal(ks[4], (ngf * 4,), jnp.float32),
        "b1": 0.1 * jax.random.normal(ks[5], (ngf * 4,), jnp.float32),
        "g2": 1.0 + 0.1 * jax.random.normal(ks[6], (ngf * 2,), jnp.float32),
        "b2": 0.1 * jax.random.normal(ks[7], (ngf * 2,), jnp.float32),
        "g3": jnp.ones((ngf,), jnp.float32),
        "b3": jnp.zeros((ngf,), jnp.float32),
    }
    # latent input, NCHW (B, nz, 1, 1) as in DCGAN
    x = jax.random.normal(ks[8], (B, nz, 1, 1), jnp.float32)

    packed = jax.tree_util.tree_map(jnp.asarray, prepare_params(params))  # one-time pack

    out = jax.block_until_ready(generator_forward(x, packed))
    assert out.shape == (B, nc, 32, 32), out.shape
    assert bool(jnp.all(jnp.isfinite(out)))

    ref = ref_forward(x, params)
    max_err = float(jnp.max(jnp.abs(out - ref)))
    assert max_err < 5e-3, f"max abs err {max_err}"

    # TODO(synk): BatchNorm running-stat (momentum) buffer updates are a
    # training-time side effect and are not reproduced here.
    print("KERNEL_OK")
</pallas_src>

<mosaic_0001>
module attributes {stable_mosaic.version = 11 : i64} {
  func.func @_gemm_bn_lrelu_kernel(%arg0: memref<256x32xf32, #tpu.memory_space<vmem>>, %arg1: memref<32x256xf32, #tpu.memory_space<vmem>>, %arg2: memref<32x1xf32, #tpu.memory_space<vmem>>, %arg3: memref<32x1xf32, #tpu.memory_space<vmem>>, %arg4: memref<32x32xf32, #tpu.memory_space<vmem>>) attributes {dimension_semantics = [], scalar_prefetch = 0 : i64, scratch_operands = 0 : i64, tpu.core_type = #tpu.core_type<tc>} {
    %c0 = arith.constant 0 : index
    %c0_0 = arith.constant 0 : index
    %0 = vector.load %arg1[%c0, %c0_0] : memref<32x256xf32, #tpu.memory_space<vmem>>, vector<32x256xf32>
    %c0_1 = arith.constant 0 : index
    %c0_2 = arith.constant 0 : index
    %1 = vector.load %arg0[%c0_1, %c0_2] : memref<256x32xf32, #tpu.memory_space<vmem>>, vector<256x32xf32>
    %cst = arith.constant dense<0.000000e+00> : vector<32x32xf32>
    %2 = tpu.matmul %0, %1, %cst {dimension_numbers = #tpu.dot_dimension_numbers<[1], [0], [0], [1], [0, 0, 1, 1], [], []>} : vector<32x256xf32>, vector<256x32xf32>, vector<32x32xf32> -> vector<32x32xf32>
    %cst_3 = arith.constant dense<0.000000e+00> : vector<32xf32>
    %3 = vector.multi_reduction <add>, %2, %cst_3 [1] : vector<32x32xf32> to vector<32xf32>
    %4 = vector.shape_cast %3 : vector<32xf32> to vector<32x1xf32>
    %cst_4 = arith.constant 3.200000e+01 : f32
    %5 = vector.broadcast %cst_4 : f32 to vector<32x1xf32>
    %6 = arith.divf %4, %5 : vector<32x1xf32>
    %7 = arith.mulf %2, %2 : vector<32x32xf32>
    %cst_5 = arith.constant dense<0.000000e+00> : vector<32xf32>
    %8 = vector.multi_reduction <add>, %7, %cst_5 [1] : vector<32x32xf32> to vector<32xf32>
    %9 = vector.shape_cast %8 : vector<32xf32> to vector<32x1xf32>
    %cst_6 = arith.constant 3.200000e+01 : f32
    %10 = vector.broadcast %cst_6 : f32 to vector<32x1xf32>
    %11 = arith.divf %9, %10 : vector<32x1xf32>
    %12 = arith.mulf %6, %6 : vector<32x1xf32>
    %13 = arith.subf %11, %12 : vector<32x1xf32>
    %c0_7 = arith.constant 0 : index
    %c0_8 = arith.constant 0 : index
    %14 = vector.load %arg2[%c0_7, %c0_8] : memref<32x1xf32, #tpu.memory_space<vmem>>, vector<32x1xf32>
    %cst_9 = arith.constant 9.99999974E-6 : f32
    %15 = vector.broadcast %cst_9 : f32 to vector<32x1xf32>
    %16 = arith.addf %13, %15 : vector<32x1xf32>
    %17 = math.rsqrt %16 : vector<32x1xf32>
    %18 = arith.mulf %14, %17 : vector<32x1xf32>
    %c0_10 = arith.constant 0 : index
    %c0_11 = arith.constant 0 : index
    %19 = vector.load %arg3[%c0_10, %c0_11] : memref<32x1xf32, #tpu.memory_space<vmem>>, vector<32x1xf32>
    %20 = arith.mulf %6, %18 : vector<32x1xf32>
    %21 = arith.subf %19, %20 : vector<32x1xf32>
    %22 = vector.broadcast %18 : vector<32x1xf32> to vector<32x32xf32>
    %23 = arith.mulf %2, %22 : vector<32x32xf32>
    %24 = vector.broadcast %21 : vector<32x1xf32> to vector<32x32xf32>
    %25 = arith.addf %23, %24 : vector<32x32xf32>
    %cst_12 = arith.constant 0.00999999977 : f32
    %26 = vector.broadcast %cst_12 : f32 to vector<32x32xf32>
    %27 = arith.mulf %26, %25 : vector<32x32xf32>
    %28 = arith.maximumf %25, %27 : vector<32x32xf32>
    %c0_13 = arith.constant 0 : index
    %c0_14 = arith.constant 0 : index
    %29 = vector.load %arg4[%c0_13, %c0_14] : memref<32x32xf32, #tpu.memory_space<vmem>>, vector<32x32xf32>
    tpu.vector_store %arg4[%c0_13, %c0_14], %28 {strides = array<i32>} : memref<32x32xf32, #tpu.memory_space<vmem>>, vector<32x32xf32>,
    return
  }
}

module attributes {stable_mosaic.version = 11 : i64} {
  func.func @_gemm_bn_lrelu_kernel(%arg0: memref<512x128xf32, #tpu.memory_space<vmem>>, %arg1: memref<16x512xf32, #tpu.memory_space<vmem>>, %arg2: memref<16x1xf32, #tpu.memory_space<vmem>>, %arg3: memref<16x1xf32, #tpu.memory_space<vmem>>, %arg4: memref<16x128xf32, #tpu.memory_space<vmem>>) attributes {dimension_semantics = [], scalar_prefetch = 0 : i64, scratch_operands = 0 : i64, tpu.core_type = #tpu.core_type<tc>} {
    %c0 = arith.constant 0 : index
    %c0_0 = arith.constant 0 : index
    %0 = vector.load %arg1[%c0, %c0_0] : memref<16x512xf32, #tpu.memory_space<vmem>>, vector<16x512xf32>
    %c0_1 = arith.constant 0 : index
    %c0_2 = arith.constant 0 : index
    %1 = vector.load %arg0[%c0_1, %c0_2] : memref<512x128xf32, #tpu.memory_space<vmem>>, vector<512x128xf32>
    %cst = arith.constant dense<0.000000e+00> : vector<16x128xf32>
    %2 = tpu.matmul %0, %1, %cst {dimension_numbers = #tpu.dot_dimension_numbers<[1], [0], [0], [1], [0, 0, 1, 1], [], []>} : vector<16x512xf32>, vector<512x128xf32>, vector<16x128xf32> -> vector<16x128xf32>
    %cst_3 = arith.constant dense<0.000000e+00> : vector<16xf32>
    %3 = vector.multi_reduction <add>, %2, %cst_3 [1] : vector<16x128xf32> to vector<16xf32>
    %4 = vector.shape_cast %3 : vector<16xf32> to vector<16x1xf32>
    %cst_4 = arith.constant 1.280000e+02 : f32
    %5 = vector.broadcast %cst_4 : f32 to vector<16x1xf32>
    %6 = arith.divf %4, %5 : vector<16x1xf32>
    %7 = arith.mulf %2, %2 : vector<16x128xf32>
    %cst_5 = arith.constant dense<0.000000e+00> : vector<16xf32>
    %8 = vector.multi_reduction <add>, %7, %cst_5 [1] : vector<16x128xf32> to vector<16xf32>
    %9 = vector.shape_cast %8 : vector<16xf32> to vector<16x1xf32>
    %cst_6 = arith.constant 1.280000e+02 : f32
    %10 = vector.broadcast %cst_6 : f32 to vector<16x1xf32>
    %11 = arith.divf %9, %10 : vector<16x1xf32>
    %12 = arith.mulf %6, %6 : vector<16x1xf32>
    %13 = arith.subf %11, %12 : vector<16x1xf32>
    %c0_7 = arith.constant 0 : index
    %c0_8 = arith.constant 0 : index
    %14 = vector.load %arg2[%c0_7, %c0_8] : memref<16x1xf32, #tpu.memory_space<vmem>>, vector<16x1xf32>
    %cst_9 = arith.constant 9.99999974E-6 : f32
    %15 = vector.broadcast %cst_9 : f32 to vector<16x1xf32>
    %16 = arith.addf %13, %15 : vector<16x1xf32>
    %17 = math.rsqrt %16 : vector<16x1xf32>
    %18 = arith.mulf %14, %17 : vector<16x1xf32>
    %c0_10 = arith.constant 0 : index
    %c0_11 = arith.constant 0 : index
    %19 = vector.load %arg3[%c0_10, %c0_11] : memref<16x1xf32, #tpu.memory_space<vmem>>, vector<16x1xf32>
    %20 = arith.mulf %6, %18 : vector<16x1xf32>
    %21 = arith.subf %19, %20 : vector<16x1xf32>
    %22 = vector.broadcast %18 : vector<16x1xf32> to vector<16x128xf32>
    %23 = arith.mulf %2, %22 : vector<16x128xf32>
    %24 = vector.broadcast %21 : vector<16x1xf32> to vector<16x128xf32>
    %25 = arith.addf %23, %24 : vector<16x128xf32>
    %cst_12 = arith.constant 0.00999999977 : f32
    %26 = vector.broadcast %cst_12 : f32 to vector<16x128xf32>
    %27 = arith.mulf %26, %25 : vector<16x128xf32>
    %28 = arith.maximumf %25, %27 : vector<16x128xf32>
    %c0_13 = arith.constant 0 : index
    %c0_14 = arith.constant 0 : index
    %29 = vector.load %arg4[%c0_13, %c0_14] : memref<16x128xf32, #tpu.memory_space<vmem>>, vector<16x128xf32>
    tpu.vector_store %arg4[%c0_13, %c0_14], %28 {strides = array<i32>} : memref<16x128xf32, #tpu.memory_space<vmem>>, vector<16x128xf32>,
    return
  }
}

module attributes {stable_mosaic.version = 11 : i64} {
  func.func @_gemm_bn_lrelu_kernel(%arg0: memref<256x512xf32, #tpu.memory_space<vmem>>, %arg1: memref<8x256xf32, #tpu.memory_space<vmem>>, %arg2: memref<8x1xf32, #tpu.memory_space<vmem>>, %arg3: memref<8x1xf32, #tpu.memory_space<vmem>>, %arg4: memref<8x512xf32, #tpu.memory_space<vmem>>) attributes {dimension_semantics = [], scalar_prefetch = 0 : i64, scratch_operands = 0 : i64, tpu.core_type = #tpu.core_type<tc>} {
    %c0 = arith.constant 0 : index
    %c0_0 = arith.constant 0 : index
    %0 = vector.load %arg1[%c0, %c0_0] : memref<8x256xf32, #tpu.memory_space<vmem>>, vector<8x256xf32>
    %c0_1 = arith.constant 0 : index
    %c0_2 = arith.constant 0 : index
    %1 = vector.load %arg0[%c0_1, %c0_2] : memref<256x512xf32, #tpu.memory_space<vmem>>, vector<256x512xf32>
    %cst = arith.constant dense<0.000000e+00> : vector<8x512xf32>
    %2 = tpu.matmul %0, %1, %cst {dimension_numbers = #tpu.dot_dimension_numbers<[1], [0], [0], [1], [0, 0, 1, 1], [], []>} : vector<8x256xf32>, vector<256x512xf32>, vector<8x512xf32> -> vector<8x512xf32>
    %cst_3 = arith.constant dense<0.000000e+00> : vector<8xf32>
    %3 = vector.multi_reduction <add>, %2, %cst_3 [1] : vector<8x512xf32> to vector<8xf32>
    %4 = vector.shape_cast %3 : vector<8xf32> to vector<8x1xf32>
    %cst_4 = arith.constant 5.120000e+02 : f32
    %5 = vector.broadcast %cst_4 : f32 to vector<8x1xf32>
    %6 = arith.divf %4, %5 : vector<8x1xf32>
    %7 = arith.mulf %2, %2 : vector<8x512xf32>
    %cst_5 = arith.constant dense<0.000000e+00> : vector<8xf32>
    %8 = vector.multi_reduction <add>, %7, %cst_5 [1] : vector<8x512xf32> to vector<8xf32>
    %9 = vector.shape_cast %8 : vector<8xf32> to vector<8x1xf32>
    %cst_6 = arith.constant 5.120000e+02 : f32
    %10 = vector.broadcast %cst_6 : f32 to vector<8x1xf32>
    %11 = arith.divf %9, %10 : vector<8x1xf32>
    %12 = arith.mulf %6, %6 : vector<8x1xf32>
    %13 = arith.subf %11, %12 : vector<8x1xf32>
    %c0_7 = arith.constant 0 : index
    %c0_8 = arith.constant 0 : index
    %14 = vector.load %arg2[%c0_7, %c0_8] : memref<8x1xf32, #tpu.memory_space<vmem>>, vector<8x1xf32>
    %cst_9 = arith.constant 9.99999974E-6 : f32
    %15 = vector.broadcast %cst_9 : f32 to vector<8x1xf32>
    %16 = arith.addf %13, %15 : vector<8x1xf32>
    %17 = math.rsqrt %16 : vector<8x1xf32>
    %18 = arith.mulf %14, %17 : vector<8x1xf32>
    %c0_10 = arith.constant 0 : index
    %c0_11 = arith.constant 0 : index
    %19 = vector.load %arg3[%c0_10, %c0_11] : memref<8x1xf32, #tpu.memory_space<vmem>>, vector<8x1xf32>
    %20 = arith.mulf %6, %18 : vector<8x1xf32>
    %21 = arith.subf %19, %20 : vector<8x1xf32>
    %22 = vector.broadcast %18 : vector<8x1xf32> to vector<8x512xf32>
    %23 = arith.mulf %2, %22 : vector<8x512xf32>
    %24 = vector.broadcast %21 : vector<8x1xf32> to vector<8x512xf32>
    %25 = arith.addf %23, %24 : vector<8x512xf32>
    %cst_12 = arith.constant 0.00999999977 : f32
    %26 = vector.broadcast %cst_12 : f32 to vector<8x512xf32>
    %27 = arith.mulf %26, %25 : vector<8x512xf32>
    %28 = arith.maximumf %25, %27 : vector<8x512xf32>
    %c0_13 = arith.constant 0 : index
    %c0_14 = arith.constant 0 : index
    %29 = vector.load %arg4[%c0_13, %c0_14] : memref<8x512xf32, #tpu.memory_space<vmem>>, vector<8x512xf32>
    tpu.vector_store %arg4[%c0_13, %c0_14], %28 {strides = array<i32>} : memref<8x512xf32, #tpu.memory_space<vmem>>, vector<8x512xf32>,
    return
  }
}

module attributes {stable_mosaic.version = 11 : i64} {
  func.func @_gemm_tanh_kernel(%arg0: memref<128x2048xf32, #tpu.memory_space<vmem>>, %arg1: memref<3x128xf32, #tpu.memory_space<vmem>>, %arg2: memref<3x2048xf32, #tpu.memory_space<vmem>>) attributes {dimension_semantics = [], scalar_prefetch = 0 : i64, scratch_operands = 0 : i64, tpu.core_type = #tpu.core_type<tc>} {
    %c0 = arith.constant 0 : index
    %c0_0 = arith.constant 0 : index
    %0 = vector.load %arg1[%c0, %c0_0] : memref<3x128xf32, #tpu.memory_space<vmem>>, vector<3x128xf32>
    %c0_1 = arith.constant 0 : index
    %c0_2 = arith.constant 0 : index
    %1 = vector.load %arg0[%c0_1, %c0_2] : memref<128x2048xf32, #tpu.memory_space<vmem>>, vector<128x2048xf32>
    %cst = arith.constant dense<0.000000e+00> : vector<3x2048xf32>
    %2 = tpu.matmul %0, %1, %cst {dimension_numbers = #tpu.dot_dimension_numbers<[1], [0], [0], [1], [0, 0, 1, 1], [], []>} : vector<3x128xf32>, vector<128x2048xf32>, vector<3x2048xf32> -> vector<3x2048xf32>
    %3 = math.tanh %2 : vector<3x2048xf32>
    %c0_3 = arith.constant 0 : index
    %c0_4 = arith.constant 0 : index
    %4 = vector.load %arg2[%c0_3, %c0_4] : memref<3x2048xf32, #tpu.memory_space<vmem>>, vector<3x2048xf32>
    tpu.vector_store %arg2[%c0_3, %c0_4], %3 {strides = array<i32>} : memref<3x2048xf32, #tpu.memory_space<vmem>>, vector<3x2048xf32>,
    return
  }
}

</mosaic_0001>

<bundles_post_ra>
// kernel: generator_forward.4
= control target key start
LH: loop header
LB: loop body
LE: loop exit
PB: predicated region body
PF: predicated region fallthrough
CT: control target
= control target key end

     0   :  { %vm115_vm0 = vcmask 261120   ;;  %s576_s0 = inlined_call_operand.vmem [shape: f32[256,32], index: 0, kind: input, shape index: {}]   ;;  %s577_s1 = inlined_call_operand.vmem [shape: f32[32,256], index: 1, kind: input, shape index: {}]   ;;  %s578_s2 = inlined_call_operand.vmem [shape: f32[32,1], index: 2, kind: input, shape index: {}]   ;;  %s579_s3 = inlined_call_operand.vmem [shape: f32[32,1], index: 3, kind: input, shape index: {}]   ;;  %s580_s4 = inlined_call_operand.vmem [shape: f32[32,32], index: 4, kind: output, shape index: {}]  }
   0x1   :  { %v40_v0 = vld [vmem:[%s576_s0 + $0x78] sm:$0xff]  ;;  %v39_v2 = vld [vmem:[%s576_s0 + $0x70] sm:$0xff]  ;;  %v38_v4 = vld [vmem:[%s576_s0 + $0x68] sm:$0xff] }
   0x2   :  { %v56_v1 = vld [vmem:[%s576_s0 + $0xf8] sm:$0xff]  ;;  %57 = vmatpush.msra.mxu0 %v40_v0  ;;  %295 = vmatpush.msra.mxu2 %v40_v0  ;;  %v55_v3 = vld [vmem:[%s576_s0 + $0xf0] sm:$0xff]  ;;  %v54_v5 = vld [vmem:[%s576_s0 + $0xe8] sm:$0xff]  ;;  %v342_v0 = vmov 32.0  }
   0x3   :  { %86 = vmatpush.msra.mxu1 %v56_v1  ;;  %311 = vmatpush.msra.mxu3 %v56_v1  ;;  %v37_v6 = vld [vmem:[%s576_s0 + $0x60] sm:$0xff]  ;;  %v36_v8 = vld [vmem:[%s576_s0 + $0x58] sm:$0xff]  ;;  %v35_v10 = vld [vmem:[%s576_s0 + $0x50] sm:$0xff]  ;;  %332 = vrcp.f32 %v342_v0 }
   0x4   :  { %58 = vmatpush.msra.mxu0 %v39_v2  ;;  %296 = vmatpush.msra.mxu2 %v39_v2  ;;  %v53_v7 = vld [vmem:[%s576_s0 + $0xe0] sm:$0xff]  ;;  %v52_v9 = vld [vmem:[%s576_s0 + $0xd8] sm:$0xff]  ;;  %v51_v11 = vld [vmem:[%s576_s0 + $0xd0] sm:$0xff] }
   0x5   :  { %87 = vmatpush.msra.mxu1 %v55_v3  ;;  %312 = vmatpush.msra.mxu3 %v55_v3  ;;  %v34_v12 = vld [vmem:[%s576_s0 + $0x48] sm:$0xff]  ;;  %v33_v14 = vld [vmem:[%s576_s0 + $0x40] sm:$0xff]  ;;  %v32_v16 = vld [vmem:[%s576_s0 + $0x38] sm:$0xff] }
   0x6   :  { %59 = vmatpush.msra.mxu0 %v38_v4  ;;  %297 = vmatpush.msra.mxu2 %v38_v4  ;;  %v50_v13 = vld [vmem:[%s576_s0 + $0xc8] sm:$0xff]  ;;  %v49_v15 = vld [vmem:[%s576_s0 + $0xc0] sm:$0xff]  ;;  %v48_v17 = vld [vmem:[%s576_s0 + $0xb8] sm:$0xff] }
   0x7   :  { %88 = vmatpush.msra.mxu1 %v54_v5  ;;  %313 = vmatpush.msra.mxu3 %v54_v5  ;;  %v31_v18 = vld [vmem:[%s576_s0 + $0x30] sm:$0xff]  ;;  %v30_v20 = vld [vmem:[%s576_s0 + $0x28] sm:$0xff]  ;;  %v29_v22 = vld [vmem:[%s576_s0 + $0x20] sm:$0xff] }
   0x8   :  { %60 = vmatpush.msra.mxu0 %v37_v6  ;;  %298 = vmatpush.msra.mxu2 %v37_v6  ;;  %v47_v19 = vld [vmem:[%s576_s0 + $0xb0] sm:$0xff]  ;;  %v46_v21 = vld [vmem:[%s576_s0 + $0xa8] sm:$0xff]  ;;  %v45_v23 = vld [vmem:[%s576_s0 + $0xa0] sm:$0xff]  ;;  %v343_v6 = vmov 0  }
   0x9   :  { %89 = vmatpush.msra.mxu1 %v53_v7  ;;  %314 = vmatpush.msra.mxu3 %v53_v7  ;;  %v28_v24 = vld [vmem:[%s576_s0 + $0x18] sm:$0xff]  ;;  %v27_v26 = vld [vmem:[%s576_s0 + $0x10] sm:$0xff]  ;;  %v26_v28 = vld [vmem:[%s576_s0 + $0x8] sm:$0xff]  ;;  %v333_v1 = vpop.eup %332 }
   0xa   :  { %61 = vmatpush.msra.mxu0 %v36_v8  ;;  %299 = vmatpush.msra.mxu2 %v36_v8  ;;  %v44_v25 = vld [vmem:[%s576_s0 + $0x98] sm:$0xff]  ;;  %v43_v27 = vld [vmem:[%s576_s0 + $0x90] sm:$0xff]  ;;  %v42_v29 = vld [vmem:[%s576_s0 + $0x88] sm:$0xff]  ;;  %v129_v2 = vmul.f32 32.0, %v333_v1  ;;  %vm133_vm1 = vweird.f32 %v333_v1 }
   0xb   :  { %90 = vmatpush.msra.mxu1 %v52_v9  ;;  %315 = vmatpush.msra.mxu3 %v52_v9  ;;  %v25_v30 = vld [vmem:[%s576_s0] sm:$0xff]  ;;  %v18_v34 = vld [vmem:[%s577_s1 + $0x8] sm:$0xff]  ;;  %v19_v36 = vld [vmem:[%s577_s1 + $0x10] sm:$0xff] }
   0xc   :  { %62 = vmatpush.msra.mxu0 %v35_v10  ;;  %300 = vmatpush.msra.mxu2 %v35_v10  ;;  %v41_v31 = vld [vmem:[%s576_s0 + $0x80] sm:$0xff]  ;;  %v22_v35 = vld [vmem:[%s577_s1 + $0x28] sm:$0xff]  ;;  %v23_v37 = vld [vmem:[%s577_s1 + $0x30] sm:$0xff]  ;;  %v130_v3 = vsub.f32 1.0, %v129_v2 }
   0xd   :  { %91 = vmatpush.msra.mxu1 %v51_v11  ;;  %316 = vmatpush.msra.mxu3 %v51_v11  ;;  %v17_v32 = vld [vmem:[%s577_s1] sm:$0xff]  ;;  %v20_v38 = vld [vmem:[%s577_s1 + $0x18] sm:$0xff] }
   0xe   :  { %63 = vmatpush.msra.mxu0 %v34_v12  ;;  %301 = vmatpush.msra.mxu2 %v34_v12  ;;  %v21_v33 = vld [vmem:[%s577_s1 + $0x20] sm:$0xff]  ;;  %v24_v39 = vld [vmem:[%s577_s1 + $0x38] sm:$0xff]  ;;  %v131_v4 = vmul.f32 %v333_v1, %v130_v3 }
   0xf   :  { %92 = vmatpush.msra.mxu1 %v50_v13  ;;  %317 = vmatpush.msra.mxu3 %v50_v13 }
  0x10   :  { %64 = vmatpush.msra.mxu0 %v33_v14  ;;  %302 = vmatpush.msra.mxu2 %v33_v14  ;;  %v132_v5 = vadd.f32 %v333_v1, %v131_v4 }
  0x11   :  { %93 = vmatpush.msra.mxu1 %v49_v15  ;;  %318 = vmatpush.msra.mxu3 %v49_v15 }
  0x12   :  { %65 = vmatpush.msra.mxu0 %v32_v16  ;;  %303 = vmatpush.msra.mxu2 %v32_v16  ;;  %v134_v7 = vsel %vm133_vm1, %v333_v1, %v132_v5  ;;  %v169_v5 = vld [vmem:[%s578_s2 + $0x10] sm:$0xff] }
  0x13   :  { %94 = vmatpush.msra.mxu1 %v48_v17  ;;  %319 = vmatpush.msra.mxu3 %v48_v17 }
  0x14   :  { %66 = vmatpush.msra.mxu0 %v31_v18  ;;  %304 = vmatpush.msra.mxu2 %v31_v18 }
  0x15   :  { %95 = vmatpush.msra.mxu1 %v47_v19  ;;  %320 = vmatpush.msra.mxu3 %v47_v19 }
  0x16   :  { %67 = vmatpush.msra.mxu0 %v30_v20  ;;  %305 = vmatpush.msra.mxu2 %v30_v20 }
  0x17   :  { %96 = vmatpush.msra.mxu1 %v46_v21  ;;  %321 = vmatpush.msra.mxu3 %v46_v21 }
  0x18   :  { %68 = vmatpush.msra.mxu0 %v29_v22  ;;  %306 = vmatpush.msra.mxu2 %v29_v22 }
  0x19   :  { %97 = vmatpush.msra.mxu1 %v45_v23  ;;  %322 = vmatpush.msra.mxu3 %v45_v23 }
  0x1a   :  { %69 = vmatpush.msra.mxu0 %v28_v24  ;;  %307 = vmatpush.msra.mxu2 %v28_v24 }
  0x1b   :  { %98 = vmatpush.msra.mxu1 %v44_v25  ;;  %323 = vmatpush.msra.mxu3 %v44_v25 }
  0x1c   :  { %70 = vmatpush.msra.mxu0 %v27_v26  ;;  %308 = vmatpush.msra.mxu2 %v27_v26 }
  0x1d   :  { %99 = vmatpush.msra.mxu1 %v43_v27  ;;  %324 = vmatpush.msra.mxu3 %v43_v27 }
  0x1e   :  { %71 = vmatpush.msra.mxu0 %v26_v28  ;;  %309 = vmatpush.msra.mxu2 %v26_v28 }
  0x1f   :  { %100 = vmatpush.msra.mxu1 %v42_v29  ;;  %325 = vmatpush.msra.mxu3 %v42_v29 }
  0x20   :  { %72 = vmatpush.msra.mxu0 %v25_v30  ;;  %310 = vmatpush.msra.mxu2 %v25_v30 }
  0x21   :  { %101 = vmatpush.msra.mxu1 %v41_v31  ;;  %326 = vmatpush.msra.mxu3 %v41_v31 }
  0x22   :  { %73 = vmatmul.f32.vlgmr.msra.gmra.mxu0 %v17_v32  ;;  %79 = vmatmul.f32.vlgmr.msra.gmra.mxu2 %v21_v33 }
  0x23   :  { %102 = vmatmul.f32.vlgmr.msra.gmra.mxu1 %v18_v34  ;;  %108 = vmatmul.f32.vlgmr.msra.gmra.mxu3 %v22_v35 }
  0x24   :  { %329 = vset.pattern.permute.xlu2 %v343_v6  ;;  %330 = vset.pattern.permute.xlu0 %v343_v6 }
  0x25   :  { %331 = vset.pattern.permute.xlu1 %v343_v6 }
  0x2a   :  { %76 = vmatmul.f32.gmra.mxu0 %v19_v36  ;;  %82 = vmatmul.f32.gmra.mxu2 %v23_v37 }
  0x2b   :  { %105 = vmatmul.f32.gmra.mxu1 %v20_v38  ;;  %111 = vmatmul.f32.gmra.mxu3 %v24_v39 }
  0x9f   :  { %v74_v40 = vpop.f32.mrf.mxu0 }
  0xa0   :  { %v103_v41 = vpop.f32.mrf.mxu1 }
  0xa1   :  { %v489_v42 = vadd.f32 %v103_v41, %v74_v40  ;;  %v167_v41 = vld [vmem:[%s578_s2] sm:$0xff] }
  0xa3   :  { %v116_v43 = vsel %vm115_vm0, %v489_v42, 0.0  ;;  %v139_v44 = vmul.f32 %v489_v42, %v489_v42 }
  0xa4   :  { %117 = vadd.xlane.f32.xlu0 %v116_v43 }
  0xa5   :  { %v80_v45 = vpop.f32.mrf.mxu2  ;;  %v143_v46 = vsel %vm115_vm0, %v139_v44, 0.0 }
  0xa6   :  { %v109_v47 = vpop.f32.mrf.mxu3  ;;  %144 = vadd.xlane.f32.xlu2 %v143_v46 }
  0xa7   :  { %v496_v48 = vadd.f32 %v109_v47, %v80_v45  ;;  %v77_v49 = vpop.f32.mrf.mxu0 }
  0xa8   :  { %v106_v50 = vpop.f32.mrf.mxu1 }
  0xa9   :  { %v498_v51 = vadd.f32 %v106_v50, %v77_v49  ;;  %v122_v52 = vsel %vm115_vm0, %v496_v48, 0.0  ;;  %v141_v59 = vmul.f32 %v496_v48, %v496_v48 }
  0xaa   :  { %123 = vadd.xlane.f32.xlu1 %v122_v52 }
  0xab   :  { %v119_v53 = vsel %vm115_vm0, %v498_v51, 0.0  ;;  %v140_v54 = vmul.f32 %v498_v51, %v498_v51  ;;  %v149_v61 = vsel %vm115_vm0, %v141_v59, 0.0  ;;  %v168_v59 = vld [vmem:[%s578_s2 + $0x8] sm:$0xff] }
  0xac   :  { %120 = vadd.xlane.f32.xlu0 %v119_v53 }
  0xad   :  { %v83_v55 = vpop.f32.mrf.mxu2  ;;  %v146_v56 = vsel %vm115_vm0, %v140_v54, 0.0 }
  0xae   :  { %v112_v57 = vpop.f32.mrf.mxu3  ;;  %147 = vadd.xlane.f32.xlu2 %v146_v56 }
  0xaf   :  { %v507_v58 = vadd.f32 %v112_v57, %v83_v55  ;;  %v219_v57 = vld [vmem:[%s579_s3] sm:$0xff] }
  0xb1   :  { %v125_v60 = vsel %vm115_vm0, %v507_v58, 0.0  ;;  %v142_v62 = vmul.f32 %v507_v58, %v507_v58 }
  0xb2   :  { %126 = vadd.xlane.f32.xlu1 %v125_v60 }
  0xb3   :  { %v152_v63 = vsel %vm115_vm0, %v142_v62, 0.0 }
  0xb4   :  { %150 = vadd.xlane.f32.xlu0 %v149_v61 }
  0xba   :  { %153 = vadd.xlane.f32.xlu1 %v152_v63 }
 0x117   :  { %v118_v8 = vpop.xlane.xlu0 %117 }
 0x118   :  { %v135_v9 = vmul.f32 %v134_v7, %v118_v8 }
 0x119   :  { %v145_v10 = vpop.xlane.xlu2 %144 }
 0x11a   :  { %v159_v11 = vmul.f32 %v135_v9, %v135_v9  ;;  %v155_v12 = vmul.f32 %v145_v10, %v134_v7 }
 0x11c   :  { %v163_v13 = vsub.f32 %v155_v12, %v159_v11  ;;  %v170_v11 = vld [vmem:[%s578_s2 + $0x18] sm:$0xff] }
 0x11d   :  { %v124_v14 = vpop.xlane.xlu1 %123 }
 0x11e   :  { %v171_v15 = vadd.f32 1e-05, %v163_v13  ;;  %v521_v21 = vmul.f32 %v134_v7, %v124_v14 }
 0x11f   :  { %v121_v16 = vpop.xlane.xlu0 %120 }
 0x120   :  { %334 = vrsqrt.f32 %v171_v15  ;;  %v517_v17 = vmul.f32 %v134_v7, %v121_v16  ;;  %v161_v28 = vmul.f32 %v521_v21, %v521_v21  ;;  %vm181_vm3 = vweird.f32 %v171_v15 }
 0x121   :  { %v148_v18 = vpop.xlane.xlu2 %147 }
 0x122   :  { %v160_v19 = vmul.f32 %v517_v17, %v517_v17  ;;  %v156_v20 = vmul.f32 %v148_v18, %v134_v7 }
 0x124   :  { %v164_v22 = vsub.f32 %v156_v20, %v160_v19  ;;  %v221_v20 = vld [vmem:[%s579_s3 + $0x10] sm:$0xff] }
 0x125   :  { %v127_v23 = vpop.xlane.xlu1 %126 }
 0x126   :  { %v335_v24 = vpop.eup %334  ;;  %v172_v25 = vadd.f32 1e-05, %v164_v22  ;;  %v525_v29 = vmul.f32 %v134_v7, %v127_v23 }
 0x127   :  { %v176_v26 = vmul.f32 %v335_v24, %v171_v15  ;;  %v151_v27 = vpop.xlane.xlu0 %150  ;;  %vm182_vm2 = vweird.f32 %v335_v24  ;;  %v220_v15 = vld [vmem:[%s579_s3 + $0x8] sm:$0xff] }
 0x128   :  { %336 = vrsqrt.f32 %v172_v25  ;;  %v157_v30 = vmul.f32 %v151_v27, %v134_v7  ;;  %v162_v34 = vmul.f32 %v525_v29, %v525_v29  ;;  %vm183_vm4 = vmor %vm181_vm3, %vm182_vm2  ;;  %vm191_vm6 = vweird.f32 %v172_v25 }
 0x129   :  { %v177_v31 = vmul.f32 %v335_v24, %v176_v26 }
 0x12a   :  { %v165_v32 = vsub.f32 %v157_v30, %v161_v28 }
 0x12b   :  { %v178_v33 = vmul.f32 0.5, %v177_v31 }
 0x12c   :  { %v173_v35 = vadd.f32 1e-05, %v165_v32 }
 0x12d   :  { %v179_v36 = vsub.f32 1.5, %v178_v33  ;;  %v154_v37 = vpop.xlane.xlu1 %153 }
 0x12e   :  { %v337_v38 = vpop.eup %336  ;;  %338 = vrsqrt.f32 %v173_v35  ;;  %v158_v39 = vmul.f32 %v154_v37, %v134_v7  ;;  %vm201_vm9 = vweird.f32 %v173_v35 }
 0x12f   :  { %v186_v40 = vmul.f32 %v337_v38, %v172_v25  ;;  %v180_v43 = vmul.f32 %v335_v24, %v179_v36  ;;  %vm192_vm5 = vweird.f32 %v337_v38 }
 0x130   :  { %v166_v44 = vsub.f32 %v158_v39, %v162_v34  ;;  %vm193_vm7 = vmor %vm191_vm6, %vm192_vm5 }
 0x131   :  { %v187_v45 = vmul.f32 %v337_v38, %v186_v40  ;;  %v184_v46 = vsel %vm183_vm4, %v335_v24, %v180_v43 }
 0x132   :  { %v174_v47 = vadd.f32 1e-05, %v166_v44  ;;  %v215_v49 = vmul.f32 %v184_v46, %v167_v41 }
 0x133   :  { %v188_v50 = vmul.f32 0.5, %v187_v45 }
 0x134   :  { %v339_v52 = vpop.eup %338  ;;  %340 = vrsqrt.f32 %v174_v47  ;;  %233 = vperm.xlu2 %329, %v215_v49   ;;  %v223_v55 = vmul.f32 %v215_v49, %v135_v9  ;;  %vm211_vm12 = vweird.f32 %v174_v47 }
 0x135   :  { %v189_v53 = vsub.f32 1.5, %v188_v50  ;;  %v196_v54 = vmul.f32 %v339_v52, %v173_v35  ;;  %vm202_vm8 = vweird.f32 %v339_v52 }
 0x136   :  { %v227_v0 = vsub.f32 %v219_v57, %v223_v55  ;;  %vm203_vm10 = vmor %vm201_vm9, %vm202_vm8 }
 0x137   :  { %v197_v56 = vmul.f32 %v339_v52, %v196_v54  ;;  %v190_v60 = vmul.f32 %v337_v38, %v189_v53 }
 0x139   :  { %v198_v61 = vmul.f32 0.5, %v197_v56  ;;  %v194_v62 = vsel %vm193_vm7, %v337_v38, %v190_v60 }
 0x13a   :  { %v341_v63 = vpop.eup %340  ;;  %v216_v1 = vmul.f32 %v194_v62, %v168_v59 }
 0x13b   :  { %v199_v2 = vsub.f32 1.5, %v198_v61  ;;  %v206_v3 = vmul.f32 %v341_v63, %v174_v47  ;;  %vm212_vm11 = vweird.f32 %v341_v63 }
 0x13c   :  { %257 = vperm.xlu2 %329, %v227_v0   ;;  %238 = vperm.xlu0 %330, %v216_v1   ;;  %vm213_vm13 = vmor %vm211_vm12, %vm212_vm11  ;;  %v224_v13 = vmul.f32 %v216_v1, %v517_v17  ;;  %v222_v17 = vld [vmem:[%s579_s3 + $0x18] sm:$0xff] }
 0x13d   :  { %v207_v4 = vmul.f32 %v341_v63, %v206_v3  ;;  %v200_v6 = vmul.f32 %v339_v52, %v199_v2 }
 0x13e   :  { %v228_v18 = vsub.f32 %v220_v15, %v224_v13 }
 0x13f   :  { %v208_v7 = vmul.f32 0.5, %v207_v4  ;;  %v204_v8 = vsel %vm203_vm10, %v339_v52, %v200_v6 }
 0x140   :  { %v217_v9 = vmul.f32 %v204_v8, %v169_v5 }
 0x141   :  { %v209_v10 = vsub.f32 1.5, %v208_v7 }
 0x142   :  { %243 = vperm.xlu1 %331, %v217_v9   ;;  %v225_v19 = vmul.f32 %v217_v9, %v521_v21 }
 0x143   :  { %v210_v12 = vmul.f32 %v341_v63, %v209_v10 }
 0x144   :  { %v229_v23 = vsub.f32 %v221_v20, %v225_v19 }
 0x145   :  { %v214_v14 = vsel %vm213_vm13, %v341_v63, %v210_v12 }
 0x146   :  { %v218_v16 = vmul.f32 %v214_v14, %v170_v11 }
 0x148   :  { %248 = vperm.xlu2 %329, %v218_v16   ;;  %v226_v22 = vmul.f32 %v218_v16, %v525_v29 }
 0x14a   :  { %262 = vperm.xlu1 %331, %v228_v18   ;;  %v230_v24 = vsub.f32 %v222_v17, %v226_v22 }
 0x150   :  { %267 = vperm.xlu2 %329, %v229_v23  }
 0x152   :  { %272 = vperm.xlu1 %331, %v230_v24  }
 0x18e   :  { %v234_v25 = vpop.permute.xlu2 %233 }
 0x18f   :  { %v251_v26 = vmul.f32 %v234_v25, %v489_v42 }
 0x196   :  { %v258_v27 = vpop.permute.xlu2 %257 }
 0x197   :  { %v275_v28 = vadd.f32 %v258_v27, %v251_v26 }
 0x199   :  { %v279_v21 = vmul.f32 0.01, %v275_v28 }
 0x19b   :  { %v283_v30 = vmax.f32 %v275_v28, %v279_v21 }
 0x19d   :  { %287 = vst.msk [vmem:[%s580_s4] sm:$0xff] %vm115_vm0, %v283_v30 }
 0x1a2   :  { %v249_v29 = vpop.permute.xlu2 %248 }
 0x1a3   :  { %v254_v43 = vmul.f32 %v249_v29, %v507_v58 }
 0x1aa   :  { %v268_v33 = vpop.permute.xlu2 %267 }
 0x1ae   :  { %v239_v35 = vpop.permute.xlu0 %238 }
 0x1af   :  { %v252_v37 = vmul.f32 %v239_v35, %v498_v51 }
 0x1b4   :  { %v244_v31 = vpop.permute.xlu1 %243 }
 0x1b5   :  { %v253_v32 = vmul.f32 %v244_v31, %v496_v48 }
 0x1b7   :  { %v277_v34 = vadd.f32 %v268_v33, %v253_v32 }
 0x1b9   :  { %v281_v36 = vmul.f32 0.01, %v277_v34 }
 0x1bb   :  { %v285_v42 = vmax.f32 %v277_v34, %v281_v36 }
 0x1bc   :  { %v263_v38 = vpop.permute.xlu1 %262 }
 0x1bd   :  { %289 = vst.msk [vmem:[%s580_s4 + $0x10] sm:$0xff] %vm115_vm0, %v285_v42  ;;  %v276_v39 = vadd.f32 %v263_v38, %v252_v37 }
 0x1bf   :  { %v280_v40 = vmul.f32 0.01, %v276_v39 }
 0x1c1   :  { %v284_v41 = vmax.f32 %v276_v39, %v280_v40 }
 0x1c3   :  { %288 = vst.msk [vmem:[%s580_s4 + $0x8] sm:$0xff] %vm115_vm0, %v284_v41 }
 0x1c4   :  { %v273_v48 = vpop.permute.xlu1 %272 }
 0x1c5   :  { %v278_v44 = vadd.f32 %v273_v48, %v254_v43 }
 0x1c7   :  { %v282_v51 = vmul.f32 0.01, %v278_v44 }
 0x1c9   :  { %v286_v45 = vmax.f32 %v278_v44, %v282_v51 }
 0x1cb   :  { %290 = vst.msk [vmem:[%s580_s4 + $0x18] sm:$0xff] %vm115_vm0, %v286_v45 }

// kernel: generator_forward.5
= control target key start
LH: loop header
LB: loop body
LE: loop exit
PB: predicated region body
PF: predicated region fallthrough
CT: control target
= control target key end

     0   :  { %s556_s0 = inlined_call_operand.vmem [shape: f32[512,128], index: 0, kind: input, shape index: {}]   ;;  %s557_s1 = inlined_call_operand.vmem [shape: f32[16,512], index: 1, kind: input, shape index: {}]   ;;  %s558_s2 = inlined_call_operand.vmem [shape: f32[16,1], index: 2, kind: input, shape index: {}]   ;;  %s559_s3 = inlined_call_operand.vmem [shape: f32[16,1], index: 3, kind: input, shape index: {}]   ;;  %s560_s4 = inlined_call_operand.vmem [shape: f32[16,128], index: 4, kind: output, shape index: {}]  }
   0x1   :  { %v72_v0 = vld [vmem:[%s556_s0 + $0x178] sm:$0xff]  ;;  %v71_v1 = vld [vmem:[%s556_s0 + $0x170] sm:$0xff]  ;;  %v70_v5 = vld [vmem:[%s556_s0 + $0x168] sm:$0xff] }
   0x2   :  { %v88_v2 = vld [vmem:[%s556_s0 + $0x1f8] sm:$0xff]  ;;  %135 = vmatpush.msra.mxu2 %v72_v0  ;;  %v87_v6 = vld [vmem:[%s556_s0 + $0x1f0] sm:$0xff]  ;;  %v86_v9 = vld [vmem:[%s556_s0 + $0x1e8] sm:$0xff] }
   0x3   :  { %158 = vmatpush.msra.mxu3 %v88_v2  ;;  %v40_v3 = vld [vmem:[%s556_s0 + $0x78] sm:$0xff]  ;;  %v39_v7 = vld [vmem:[%s556_s0 + $0x70] sm:$0xff]  ;;  %v38_v10 = vld [vmem:[%s556_s0 + $0x68] sm:$0xff] }
   0x4   :  { %v56_v4 = vld [vmem:[%s556_s0 + $0xf8] sm:$0xff]  ;;  %89 = vmatpush.msra.mxu0 %v40_v3  ;;  %v55_v8 = vld [vmem:[%s556_s0 + $0xf0] sm:$0xff]  ;;  %136 = vmatpush.msra.mxu2 %v71_v1  ;;  %v69_v11 = vld [vmem:[%s556_s0 + $0x160] sm:$0xff] }
   0x5   :  { %112 = vmatpush.msra.mxu1 %v56_v4  ;;  %159 = vmatpush.msra.mxu3 %v87_v6  ;;  %v54_v12 = vld [vmem:[%s556_s0 + $0xe8] sm:$0xff]  ;;  %v85_v13 = vld [vmem:[%s556_s0 + $0x1e0] sm:$0xff]  ;;  %v68_v16 = vld [vmem:[%s556_s0 + $0x158] sm:$0xff] }
   0x6   :  { %90 = vmatpush.msra.mxu0 %v39_v7  ;;  %137 = vmatpush.msra.mxu2 %v70_v5  ;;  %v37_v14 = vld [vmem:[%s556_s0 + $0x60] sm:$0xff]  ;;  %v84_v17 = vld [vmem:[%s556_s0 + $0x1d8] sm:$0xff]  ;;  %v67_v20 = vld [vmem:[%s556_s0 + $0x150] sm:$0xff] }
   0x7   :  { %113 = vmatpush.msra.mxu1 %v55_v8  ;;  %160 = vmatpush.msra.mxu3 %v86_v9  ;;  %v53_v15 = vld [vmem:[%s556_s0 + $0xe0] sm:$0xff]  ;;  %v36_v18 = vld [vmem:[%s556_s0 + $0x58] sm:$0xff]  ;;  %v83_v21 = vld [vmem:[%s556_s0 + $0x1d0] sm:$0xff] }
   0x8   :  { %91 = vmatpush.msra.mxu0 %v38_v10  ;;  %138 = vmatpush.msra.mxu2 %v69_v11  ;;  %v52_v19 = vld [vmem:[%s556_s0 + $0xd8] sm:$0xff]  ;;  %v35_v22 = vld [vmem:[%s556_s0 + $0x50] sm:$0xff]  ;;  %v66_v24 = vld [vmem:[%s556_s0 + $0x148] sm:$0xff] }
   0x9   :  { %114 = vmatpush.msra.mxu1 %v54_v12  ;;  %161 = vmatpush.msra.mxu3 %v85_v13  ;;  %v51_v23 = vld [vmem:[%s556_s0 + $0xd0] sm:$0xff]  ;;  %v82_v25 = vld [vmem:[%s556_s0 + $0x1c8] sm:$0xff]  ;;  %v65_v28 = vld [vmem:[%s556_s0 + $0x140] sm:$0xff] }
   0xa   :  { %92 = vmatpush.msra.mxu0 %v37_v14  ;;  %139 = vmatpush.msra.mxu2 %v68_v16  ;;  %v34_v26 = vld [vmem:[%s556_s0 + $0x48] sm:$0xff]  ;;  %v81_v29 = vld [vmem:[%s556_s0 + $0x1c0] sm:$0xff]  ;;  %v64_v32 = vld [vmem:[%s556_s0 + $0x138] sm:$0xff] }
   0xb   :  { %115 = vmatpush.msra.mxu1 %v53_v15  ;;  %162 = vmatpush.msra.mxu3 %v84_v17  ;;  %v50_v27 = vld [vmem:[%s556_s0 + $0xc8] sm:$0xff]  ;;  %v33_v30 = vld [vmem:[%s556_s0 + $0x40] sm:$0xff]  ;;  %v80_v33 = vld [vmem:[%s556_s0 + $0x1b8] sm:$0xff] }
   0xc   :  { %93 = vmatpush.msra.mxu0 %v36_v18  ;;  %140 = vmatpush.msra.mxu2 %v67_v20  ;;  %v49_v31 = vld [vmem:[%s556_s0 + $0xc0] sm:$0xff]  ;;  %v32_v34 = vld [vmem:[%s556_s0 + $0x38] sm:$0xff]  ;;  %v63_v36 = vld [vmem:[%s556_s0 + $0x130] sm:$0xff] }
   0xd   :  { %116 = vmatpush.msra.mxu1 %v52_v19  ;;  %163 = vmatpush.msra.mxu3 %v83_v21  ;;  %v48_v35 = vld [vmem:[%s556_s0 + $0xb8] sm:$0xff]  ;;  %v79_v37 = vld [vmem:[%s556_s0 + $0x1b0] sm:$0xff]  ;;  %v62_v40 = vld [vmem:[%s556_s0 + $0x128] sm:$0xff] }
   0xe   :  { %94 = vmatpush.msra.mxu0 %v35_v22  ;;  %141 = vmatpush.msra.mxu2 %v66_v24  ;;  %v31_v38 = vld [vmem:[%s556_s0 + $0x30] sm:$0xff]  ;;  %v78_v41 = vld [vmem:[%s556_s0 + $0x1a8] sm:$0xff]  ;;  %v61_v44 = vld [vmem:[%s556_s0 + $0x120] sm:$0xff]  ;;  %v283_v24 = vmov 128.0  }
   0xf   :  { %117 = vmatpush.msra.mxu1 %v51_v23  ;;  %164 = vmatpush.msra.mxu3 %v82_v25  ;;  %v47_v39 = vld [vmem:[%s556_s0 + $0xb0] sm:$0xff]  ;;  %v30_v42 = vld [vmem:[%s556_s0 + $0x28] sm:$0xff]  ;;  %v77_v45 = vld [vmem:[%s556_s0 + $0x1a0] sm:$0xff]  ;;  %277 = vrcp.f32 %v283_v24 }
  0x10   :  { %95 = vmatpush.msra.mxu0 %v34_v26  ;;  %142 = vmatpush.msra.mxu2 %v65_v28  ;;  %v46_v43 = vld [vmem:[%s556_s0 + $0xa8] sm:$0xff]  ;;  %v29_v46 = vld [vmem:[%s556_s0 + $0x20] sm:$0xff]  ;;  %v60_v48 = vld [vmem:[%s556_s0 + $0x118] sm:$0xff] }
  0x11   :  { %118 = vmatpush.msra.mxu1 %v50_v27  ;;  %165 = vmatpush.msra.mxu3 %v81_v29  ;;  %v45_v47 = vld [vmem:[%s556_s0 + $0xa0] sm:$0xff]  ;;  %v76_v49 = vld [vmem:[%s556_s0 + $0x198] sm:$0xff]  ;;  %v59_v52 = vld [vmem:[%s556_s0 + $0x110] sm:$0xff] }
  0x12   :  { %96 = vmatpush.msra.mxu0 %v33_v30  ;;  %143 = vmatpush.msra.mxu2 %v64_v32  ;;  %v28_v50 = vld [vmem:[%s556_s0 + $0x18] sm:$0xff]  ;;  %v75_v53 = vld [vmem:[%s556_s0 + $0x190] sm:$0xff]  ;;  %v58_v56 = vld [vmem:[%s556_s0 + $0x108] sm:$0xff]  ;;  %v284_v30 = vmov 0  }
  0x13   :  { %119 = vmatpush.msra.mxu1 %v49_v31  ;;  %166 = vmatpush.msra.mxu3 %v80_v33  ;;  %v44_v51 = vld [vmem:[%s556_s0 + $0x98] sm:$0xff]  ;;  %v27_v54 = vld [vmem:[%s556_s0 + $0x10] sm:$0xff]  ;;  %v74_v57 = vld [vmem:[%s556_s0 + $0x188] sm:$0xff] }
  0x14   :  { %97 = vmatpush.msra.mxu0 %v32_v34  ;;  %144 = vmatpush.msra.mxu2 %v63_v36  ;;  %v43_v55 = vld [vmem:[%s556_s0 + $0x90] sm:$0xff]  ;;  %v26_v58 = vld [vmem:[%s556_s0 + $0x8] sm:$0xff]  ;;  %v57_v60 = vld [vmem:[%s556_s0 + $0x100] sm:$0xff] }
  0x15   :  { %120 = vmatpush.msra.mxu1 %v48_v35  ;;  %167 = vmatpush.msra.mxu3 %v79_v37  ;;  %v42_v59 = vld [vmem:[%s556_s0 + $0x88] sm:$0xff]  ;;  %v73_v61 = vld [vmem:[%s556_s0 + $0x180] sm:$0xff]  ;;  %v19_v62 = vld [vmem:[%s557_s1 + $0x10] sm:$0xff]  ;;  %v278_v25 = vpop.eup %277 }
  0x16   :  { %98 = vmatpush.msra.mxu0 %v31_v38  ;;  %145 = vmatpush.msra.mxu2 %v62_v40  ;;  %v20_v63 = vld [vmem:[%s557_s1 + $0x18] sm:$0xff]  ;;  %v25_v0 = vld [vmem:[%s556_s0] sm:$0xff]  ;;  %v18_v3 = vld [vmem:[%s557_s1 + $0x8] sm:$0xff]  ;;  %v186_v26 = vmul.f32 128.0, %v278_v25  ;;  %vm190_vm0 = vweird.f32 %v278_v25 }
  0x17   :  { %121 = vmatpush.msra.mxu1 %v47_v39  ;;  %168 = vmatpush.msra.mxu3 %v78_v41  ;;  %v41_v1 = vld [vmem:[%s556_s0 + $0x80] sm:$0xff]  ;;  %v23_v4 = vld [vmem:[%s557_s1 + $0x30] sm:$0xff]  ;;  %v24_v5 = vld [vmem:[%s557_s1 + $0x38] sm:$0xff] }
  0x18   :  { %99 = vmatpush.msra.mxu0 %v30_v42  ;;  %146 = vmatpush.msra.mxu2 %v61_v44  ;;  %v17_v2 = vld [vmem:[%s557_s1] sm:$0xff]  ;;  %v22_v7 = vld [vmem:[%s557_s1 + $0x28] sm:$0xff]  ;;  %v187_v27 = vsub.f32 1.0, %v186_v26 }
  0x19   :  { %122 = vmatpush.msra.mxu1 %v46_v43  ;;  %169 = vmatpush.msra.mxu3 %v77_v45  ;;  %v21_v6 = vld [vmem:[%s557_s1 + $0x20] sm:$0xff] }
  0x1a   :  { %100 = vmatpush.msra.mxu0 %v29_v46  ;;  %147 = vmatpush.msra.mxu2 %v60_v48  ;;  %v188_v28 = vmul.f32 %v278_v25, %v187_v27 }
  0x1b   :  { %123 = vmatpush.msra.mxu1 %v45_v47  ;;  %170 = vmatpush.msra.mxu3 %v76_v49 }
  0x1c   :  { %101 = vmatpush.msra.mxu0 %v28_v50  ;;  %148 = vmatpush.msra.mxu2 %v59_v52  ;;  %v189_v29 = vadd.f32 %v278_v25, %v188_v28 }
  0x1d   :  { %124 = vmatpush.msra.mxu1 %v44_v51  ;;  %171 = vmatpush.msra.mxu3 %v75_v53  ;;  %v206_v53 = vld [vmem:[%s558_s2] sm:$0xff] }
  0x1e   :  { %102 = vmatpush.msra.mxu0 %v27_v54  ;;  %149 = vmatpush.msra.mxu2 %v58_v56  ;;  %v191_v31 = vsel %vm190_vm0, %v278_v25, %v189_v29 }
  0x1f   :  { %125 = vmatpush.msra.mxu1 %v43_v55  ;;  %172 = vmatpush.msra.mxu3 %v74_v57 }
  0x20   :  { %103 = vmatpush.msra.mxu0 %v26_v58  ;;  %150 = vmatpush.msra.mxu2 %v57_v60 }
  0x21   :  { %126 = vmatpush.msra.mxu1 %v42_v59  ;;  %173 = vmatpush.msra.mxu3 %v73_v61  ;;  %v232_v59 = vld [vmem:[%s559_s3] sm:$0xff] }
  0x22   :  { %151 = vmatmul.f32.vlgmr.msra.gmra.mxu2 %v19_v62  ;;  %174 = vmatmul.f32.vlgmr.msra.gmra.mxu3 %v20_v63  ;;  %v207_v63 = vld [vmem:[%s558_s2 + $0x8] sm:$0xff] }
  0x23   :  { %104 = vmatpush.msra.mxu0 %v25_v0  ;;  %127 = vmatpush.msra.mxu1 %v41_v1 }
  0x24   :  { %105 = vmatmul.f32.vlgmr.msra.gmra.mxu0 %v17_v2  ;;  %128 = vmatmul.f32.vlgmr.msra.gmra.mxu1 %v18_v3  ;;  %v233_v3 = vld [vmem:[%s559_s3 + $0x8] sm:$0xff] }
  0x25   :  { %274 = vset.pattern.permute.xlu2 %v284_v30  ;;  %275 = vset.pattern.permute.xlu0 %v284_v30 }
  0x26   :  { %276 = vset.pattern.permute.xlu1 %v284_v30 }
  0x2a   :  { %154 = vmatmul.f32.gmra.mxu2 %v23_v4  ;;  %177 = vmatmul.f32.gmra.mxu3 %v24_v5 }
  0x2c   :  { %108 = vmatmul.f32.gmra.mxu0 %v21_v6  ;;  %131 = vmatmul.f32.gmra.mxu1 %v22_v7 }
  0xa1   :  { %v106_v8 = vpop.f32.mrf.mxu0  ;;  %v129_v9 = vpop.f32.mrf.mxu1 }
  0xa2   :  { %v130_v10 = vadd.f32 %v129_v9, %v106_v8 }
  0xa5   :  { %v152_v11 = vpop.f32.mrf.mxu2  ;;  %v175_v12 = vpop.f32.mrf.mxu3 }
  0xa6   :  { %v153_v13 = vadd.f32 %v152_v11, %v130_v10 }
  0xa8   :  { %v526_v14 = vadd.f32 %v175_v12, %v153_v13 }
  0xa9   :  { %v109_v15 = vpop.f32.mrf.mxu0  ;;  %v132_v16 = vpop.f32.mrf.mxu1 }
  0xaa   :  { %181 = vadd.xlane.f32.xlu0 %v526_v14  ;;  %v133_v17 = vadd.f32 %v132_v16, %v109_v15  ;;  %v194_v18 = vmul.f32 %v526_v14, %v526_v14 }
  0xac   :  { %196 = vadd.xlane.f32.xlu1 %v194_v18 }
  0xad   :  { %v155_v19 = vpop.f32.mrf.mxu2  ;;  %v178_v20 = vpop.f32.mrf.mxu3 }
  0xae   :  { %v156_v21 = vadd.f32 %v155_v19, %v133_v17 }
  0xb0   :  { %v531_v22 = vadd.f32 %v178_v20, %v156_v21 }
  0xb2   :  { %183 = vadd.xlane.f32.xlu0 %v531_v22  ;;  %v195_v23 = vmul.f32 %v531_v22, %v531_v22 }
  0xb4   :  { %198 = vadd.xlane.f32.xlu1 %v195_v23 }
 0x11d   :  { %v182_v32 = vpop.xlane.xlu0 %181 }
 0x11e   :  { %v192_v33 = vmul.f32 %v191_v31, %v182_v32 }
 0x11f   :  { %v197_v34 = vpop.xlane.xlu1 %196 }
 0x120   :  { %v202_v35 = vmul.f32 %v192_v33, %v192_v33  ;;  %v200_v36 = vmul.f32 %v197_v34, %v191_v31 }
 0x122   :  { %v204_v37 = vsub.f32 %v200_v36, %v202_v35 }
 0x124   :  { %v208_v38 = vadd.f32 1e-05, %v204_v37 }
 0x125   :  { %v184_v39 = vpop.xlane.xlu0 %183 }
 0x126   :  { %279 = vrsqrt.f32 %v208_v38  ;;  %v193_v40 = vmul.f32 %v191_v31, %v184_v39  ;;  %vm216_vm2 = vweird.f32 %v208_v38 }
 0x127   :  { %v199_v41 = vpop.xlane.xlu1 %198 }
 0x128   :  { %v203_v42 = vmul.f32 %v193_v40, %v193_v40  ;;  %v201_v43 = vmul.f32 %v199_v41, %v191_v31 }
 0x12a   :  { %v205_v44 = vsub.f32 %v201_v43, %v203_v42 }
 0x12c   :  { %v280_v45 = vpop.eup %279  ;;  %v209_v46 = vadd.f32 1e-05, %v205_v44 }
 0x12d   :  { %v211_v47 = vmul.f32 %v280_v45, %v208_v38  ;;  %vm217_vm1 = vweird.f32 %v280_v45 }
 0x12e   :  { %281 = vrsqrt.f32 %v209_v46  ;;  %vm218_vm3 = vmor %vm216_vm2, %vm217_vm1  ;;  %vm226_vm5 = vweird.f32 %v209_v46 }
 0x12f   :  { %v212_v48 = vmul.f32 %v280_v45, %v211_v47 }
 0x131   :  { %v213_v49 = vmul.f32 0.5, %v212_v48 }
 0x133   :  { %v214_v50 = vsub.f32 1.5, %v213_v49 }
 0x134   :  { %v282_v51 = vpop.eup %281 }
 0x135   :  { %v221_v52 = vmul.f32 %v282_v51, %v209_v46  ;;  %v215_v54 = vmul.f32 %v280_v45, %v214_v50  ;;  %vm227_vm4 = vweird.f32 %v282_v51 }
 0x136   :  { %vm228_vm6 = vmor %vm226_vm5, %vm227_vm4 }
 0x137   :  { %v222_v55 = vmul.f32 %v282_v51, %v221_v52  ;;  %v219_v56 = vsel %vm218_vm3, %v280_v45, %v215_v54 }
 0x138   :  { %v230_v57 = vmul.f32 %v219_v56, %v206_v53 }
 0x139   :  { %v223_v58 = vmul.f32 0.5, %v222_v55 }
 0x13a   :  { %240 = vperm.xlu2 %274, %v230_v57   ;;  %v234_v60 = vmul.f32 %v230_v57, %v192_v33 }
 0x13b   :  { %v224_v61 = vsub.f32 1.5, %v223_v58 }
 0x13c   :  { %v236_v62 = vsub.f32 %v232_v59, %v234_v60 }
 0x13d   :  { %v225_v0 = vmul.f32 %v282_v51, %v224_v61 }
 0x13e   :  { %252 = vperm.xlu0 %275, %v236_v62  }
 0x13f   :  { %v229_v1 = vsel %vm228_vm6, %v282_v51, %v225_v0 }
 0x140   :  { %v231_v2 = vmul.f32 %v229_v1, %v207_v63 }
 0x142   :  { %245 = vperm.xlu2 %274, %v231_v2   ;;  %v235_v4 = vmul.f32 %v231_v2, %v193_v40 }
 0x144   :  { %v237_v5 = vsub.f32 %v233_v3, %v235_v4 }
 0x146   :  { %257 = vperm.xlu1 %276, %v237_v5  }
 0x194   :  { %v241_v6 = vpop.permute.xlu2 %240 }
 0x195   :  { %v248_v7 = vmul.f32 %v241_v6, %v526_v14 }
 0x19c   :  { %v246_v11 = vpop.permute.xlu2 %245 }
 0x19d   :  { %v249_v13 = vmul.f32 %v246_v11, %v531_v22 }
 0x1b0   :  { %v253_v8 = vpop.permute.xlu0 %252 }
 0x1b1   :  { %v260_v9 = vadd.f32 %v253_v8, %v248_v7 }
 0x1b3   :  { %v262_v10 = vmul.f32 0.01, %v260_v9 }
 0x1b5   :  { %v264_v12 = vmax.f32 %v260_v9, %v262_v10 }
 0x1b7   :  { %266 = vst [vmem:[%s560_s4] sm:$0xff] %v264_v12 }
 0x1b8   :  { %v258_v15 = vpop.permute.xlu1 %257 }
 0x1b9   :  { %v261_v16 = vadd.f32 %v258_v15, %v249_v13 }
 0x1bb   :  { %v263_v17 = vmul.f32 0.01, %v261_v16 }
 0x1bd   :  { %v265_v18 = vmax.f32 %v261_v16, %v263_v17 }
 0x1bf   :  { %267 = vst [vmem:[%s560_s4 + $0x8] sm:$0xff] %v265_v18 }

// kernel: generator_forward.6
= control target key start
LH: loop header
LB: loop body
LE: loop exit
PB: predicated region body
PF: predicated region fallthrough
CT: control target
= control target key end

     0   :  { %s825_s0 = inlined_call_operand.vmem [shape: f32[256,512], index: 0, kind: input, shape index: {}]   ;;  %s826_s1 = inlined_call_operand.vmem [shape: f32[8,256], index: 1, kind: input, shape index: {}]   ;;  %s827_s2 = inlined_call_operand.vmem [shape: f32[8,1], index: 2, kind: input, shape index: {}]   ;;  %s828_s3 = inlined_call_operand.vmem [shape: f32[8,1], index: 3, kind: input, shape index: {}]   ;;  %s829_s4 = inlined_call_operand.vmem [shape: f32[8,512], index: 4, kind: output, shape index: {}]  }
   0x1   :  { %v79_v0 = vld [vmem:[%s825_s0 + $0x1e0] sm:$0xff]  ;;  %v80_v2 = vld [vmem:[%s825_s0 + $0x1e8] sm:$0xff] }
   0x2   :  { %v143_v1 = vld [vmem:[%s825_s0 + $0x3e0] sm:$0xff]  ;;  %147 = vmatpush.msra.mxu0 %v79_v0  ;;  %v144_v3 = vld [vmem:[%s825_s0 + $0x3e8] sm:$0xff]  ;;  %187 = vmatpush.msra.mxu2 %v80_v2  ;;  %v81_v0 = vld [vmem:[%s825_s0 + $0x1f0] sm:$0xff] }
   0x3   :  { %167 = vmatpush.msra.mxu1 %v143_v1  ;;  %v75_v4 = vld [vmem:[%s825_s0 + $0x1c0] sm:$0xff]  ;;  %207 = vmatpush.msra.mxu3 %v144_v3  ;;  %v76_v6 = vld [vmem:[%s825_s0 + $0x1c8] sm:$0xff]  ;;  %v145_v1 = vld [vmem:[%s825_s0 + $0x3f0] sm:$0xff] }
   0x4   :  { %v139_v5 = vld [vmem:[%s825_s0 + $0x3c0] sm:$0xff]  ;;  %v140_v7 = vld [vmem:[%s825_s0 + $0x3c8] sm:$0xff]  ;;  %148 = vmatpush.msra.mxu0 %v75_v4  ;;  %188 = vmatpush.msra.mxu2 %v76_v6  ;;  %v82_v2 = vld [vmem:[%s825_s0 + $0x1f8] sm:$0xff] }
   0x5   :  { %v71_v8 = vld [vmem:[%s825_s0 + $0x1a0] sm:$0xff]  ;;  %168 = vmatpush.msra.mxu1 %v139_v5  ;;  %v72_v10 = vld [vmem:[%s825_s0 + $0x1a8] sm:$0xff]  ;;  %208 = vmatpush.msra.mxu3 %v140_v7  ;;  %v146_v3 = vld [vmem:[%s825_s0 + $0x3f8] sm:$0xff] }
   0x6   :  { %v135_v9 = vld [vmem:[%s825_s0 + $0x3a0] sm:$0xff]  ;;  %v136_v11 = vld [vmem:[%s825_s0 + $0x3a8] sm:$0xff]  ;;  %149 = vmatpush.msra.mxu0 %v71_v8  ;;  %189 = vmatpush.msra.mxu2 %v72_v10  ;;  %v77_v4 = vld [vmem:[%s825_s0 + $0x1d0] sm:$0xff] }
   0x7   :  { %v67_v12 = vld [vmem:[%s825_s0 + $0x180] sm:$0xff]  ;;  %169 = vmatpush.msra.mxu1 %v135_v9  ;;  %v68_v14 = vld [vmem:[%s825_s0 + $0x188] sm:$0xff]  ;;  %209 = vmatpush.msra.mxu3 %v136_v11  ;;  %v141_v5 = vld [vmem:[%s825_s0 + $0x3d0] sm:$0xff] }
   0x8   :  { %v131_v13 = vld [vmem:[%s825_s0 + $0x380] sm:$0xff]  ;;  %v132_v15 = vld [vmem:[%s825_s0 + $0x388] sm:$0xff]  ;;  %150 = vmatpush.msra.mxu0 %v67_v12  ;;  %190 = vmatpush.msra.mxu2 %v68_v14  ;;  %v78_v6 = vld [vmem:[%s825_s0 + $0x1d8] sm:$0xff] }
   0x9   :  { %v63_v16 = vld [vmem:[%s825_s0 + $0x160] sm:$0xff]  ;;  %170 = vmatpush.msra.mxu1 %v131_v13  ;;  %v64_v18 = vld [vmem:[%s825_s0 + $0x168] sm:$0xff]  ;;  %210 = vmatpush.msra.mxu3 %v132_v15  ;;  %v142_v7 = vld [vmem:[%s825_s0 + $0x3d8] sm:$0xff] }
   0xa   :  { %v127_v17 = vld [vmem:[%s825_s0 + $0x360] sm:$0xff]  ;;  %v128_v19 = vld [vmem:[%s825_s0 + $0x368] sm:$0xff]  ;;  %151 = vmatpush.msra.mxu0 %v63_v16  ;;  %191 = vmatpush.msra.mxu2 %v64_v18  ;;  %v73_v8 = vld [vmem:[%s825_s0 + $0x1b0] sm:$0xff] }
   0xb   :  { %v59_v20 = vld [vmem:[%s825_s0 + $0x140] sm:$0xff]  ;;  %171 = vmatpush.msra.mxu1 %v127_v17  ;;  %v60_v22 = vld [vmem:[%s825_s0 + $0x148] sm:$0xff]  ;;  %211 = vmatpush.msra.mxu3 %v128_v19  ;;  %v137_v9 = vld [vmem:[%s825_s0 + $0x3b0] sm:$0xff] }
   0xc   :  { %v123_v21 = vld [vmem:[%s825_s0 + $0x340] sm:$0xff]  ;;  %v124_v23 = vld [vmem:[%s825_s0 + $0x348] sm:$0xff]  ;;  %152 = vmatpush.msra.mxu0 %v59_v20  ;;  %192 = vmatpush.msra.mxu2 %v60_v22  ;;  %v74_v10 = vld [vmem:[%s825_s0 + $0x1b8] sm:$0xff] }
   0xd   :  { %v55_v24 = vld [vmem:[%s825_s0 + $0x120] sm:$0xff]  ;;  %172 = vmatpush.msra.mxu1 %v123_v21  ;;  %v56_v26 = vld [vmem:[%s825_s0 + $0x128] sm:$0xff]  ;;  %212 = vmatpush.msra.mxu3 %v124_v23  ;;  %v138_v11 = vld [vmem:[%s825_s0 + $0x3b8] sm:$0xff] }
   0xe   :  { %v119_v25 = vld [vmem:[%s825_s0 + $0x320] sm:$0xff]  ;;  %v120_v27 = vld [vmem:[%s825_s0 + $0x328] sm:$0xff]  ;;  %153 = vmatpush.msra.mxu0 %v55_v24  ;;  %193 = vmatpush.msra.mxu2 %v56_v26  ;;  %v69_v12 = vld [vmem:[%s825_s0 + $0x190] sm:$0xff] }
   0xf   :  { %v51_v28 = vld [vmem:[%s825_s0 + $0x100] sm:$0xff]  ;;  %173 = vmatpush.msra.mxu1 %v119_v25  ;;  %v52_v30 = vld [vmem:[%s825_s0 + $0x108] sm:$0xff]  ;;  %213 = vmatpush.msra.mxu3 %v120_v27  ;;  %v133_v13 = vld [vmem:[%s825_s0 + $0x390] sm:$0xff] }
  0x10   :  { %v115_v29 = vld [vmem:[%s825_s0 + $0x300] sm:$0xff]  ;;  %v116_v31 = vld [vmem:[%s825_s0 + $0x308] sm:$0xff]  ;;  %154 = vmatpush.msra.mxu0 %v51_v28  ;;  %194 = vmatpush.msra.mxu2 %v52_v30  ;;  %v70_v14 = vld [vmem:[%s825_s0 + $0x198] sm:$0xff] }
  0x11   :  { %v47_v32 = vld [vmem:[%s825_s0 + $0xe0] sm:$0xff]  ;;  %174 = vmatpush.msra.mxu1 %v115_v29  ;;  %v48_v34 = vld [vmem:[%s825_s0 + $0xe8] sm:$0xff]  ;;  %214 = vmatpush.msra.mxu3 %v116_v31  ;;  %v134_v15 = vld [vmem:[%s825_s0 + $0x398] sm:$0xff] }
  0x12   :  { %v111_v33 = vld [vmem:[%s825_s0 + $0x2e0] sm:$0xff]  ;;  %v112_v35 = vld [vmem:[%s825_s0 + $0x2e8] sm:$0xff]  ;;  %155 = vmatpush.msra.mxu0 %v47_v32  ;;  %195 = vmatpush.msra.mxu2 %v48_v34  ;;  %v65_v16 = vld [vmem:[%s825_s0 + $0x170] sm:$0xff] }
  0x13   :  { %v43_v36 = vld [vmem:[%s825_s0 + $0xc0] sm:$0xff]  ;;  %175 = vmatpush.msra.mxu1 %v111_v33  ;;  %v44_v38 = vld [vmem:[%s825_s0 + $0xc8] sm:$0xff]  ;;  %215 = vmatpush.msra.mxu3 %v112_v35  ;;  %v129_v17 = vld [vmem:[%s825_s0 + $0x370] sm:$0xff] }
  0x14   :  { %v107_v37 = vld [vmem:[%s825_s0 + $0x2c0] sm:$0xff]  ;;  %v108_v39 = vld [vmem:[%s825_s0 + $0x2c8] sm:$0xff]  ;;  %156 = vmatpush.msra.mxu0 %v43_v36  ;;  %196 = vmatpush.msra.mxu2 %v44_v38  ;;  %v66_v18 = vld [vmem:[%s825_s0 + $0x178] sm:$0xff] }
  0x15   :  { %v39_v40 = vld [vmem:[%s825_s0 + $0xa0] sm:$0xff]  ;;  %176 = vmatpush.msra.mxu1 %v107_v37  ;;  %v40_v42 = vld [vmem:[%s825_s0 + $0xa8] sm:$0xff]  ;;  %216 = vmatpush.msra.mxu3 %v108_v39  ;;  %v130_v19 = vld [vmem:[%s825_s0 + $0x378] sm:$0xff] }
  0x16   :  { %v103_v41 = vld [vmem:[%s825_s0 + $0x2a0] sm:$0xff]  ;;  %v104_v43 = vld [vmem:[%s825_s0 + $0x2a8] sm:$0xff]  ;;  %157 = vmatpush.msra.mxu0 %v39_v40  ;;  %197 = vmatpush.msra.mxu2 %v40_v42  ;;  %v61_v20 = vld [vmem:[%s825_s0 + $0x150] sm:$0xff] }
  0x17   :  { %v35_v44 = vld [vmem:[%s825_s0 + $0x80] sm:$0xff]  ;;  %177 = vmatpush.msra.mxu1 %v103_v41  ;;  %v36_v46 = vld [vmem:[%s825_s0 + $0x88] sm:$0xff]  ;;  %217 = vmatpush.msra.mxu3 %v104_v43  ;;  %v125_v21 = vld [vmem:[%s825_s0 + $0x350] sm:$0xff] }
  0x18   :  { %v99_v45 = vld [vmem:[%s825_s0 + $0x280] sm:$0xff]  ;;  %v100_v47 = vld [vmem:[%s825_s0 + $0x288] sm:$0xff]  ;;  %158 = vmatpush.msra.mxu0 %v35_v44  ;;  %198 = vmatpush.msra.mxu2 %v36_v46  ;;  %v62_v22 = vld [vmem:[%s825_s0 + $0x158] sm:$0xff] }
  0x19   :  { %v31_v48 = vld [vmem:[%s825_s0 + $0x60] sm:$0xff]  ;;  %178 = vmatpush.msra.mxu1 %v99_v45  ;;  %v32_v50 = vld [vmem:[%s825_s0 + $0x68] sm:$0xff]  ;;  %218 = vmatpush.msra.mxu3 %v100_v47  ;;  %v126_v23 = vld [vmem:[%s825_s0 + $0x358] sm:$0xff] }
  0x1a   :  { %v95_v49 = vld [vmem:[%s825_s0 + $0x260] sm:$0xff]  ;;  %v96_v51 = vld [vmem:[%s825_s0 + $0x268] sm:$0xff]  ;;  %159 = vmatpush.msra.mxu0 %v31_v48  ;;  %199 = vmatpush.msra.mxu2 %v32_v50  ;;  %v57_v24 = vld [vmem:[%s825_s0 + $0x130] sm:$0xff] }
  0x1b   :  { %v27_v52 = vld [vmem:[%s825_s0 + $0x40] sm:$0xff]  ;;  %179 = vmatpush.msra.mxu1 %v95_v49  ;;  %v28_v54 = vld [vmem:[%s825_s0 + $0x48] sm:$0xff]  ;;  %219 = vmatpush.msra.mxu3 %v96_v51  ;;  %v121_v25 = vld [vmem:[%s825_s0 + $0x330] sm:$0xff] }
  0x1c   :  { %v91_v53 = vld [vmem:[%s825_s0 + $0x240] sm:$0xff]  ;;  %v92_v55 = vld [vmem:[%s825_s0 + $0x248] sm:$0xff]  ;;  %160 = vmatpush.msra.mxu0 %v27_v52  ;;  %200 = vmatpush.msra.mxu2 %v28_v54  ;;  %v58_v26 = vld [vmem:[%s825_s0 + $0x138] sm:$0xff] }
  0x1d   :  { %v23_v56 = vld [vmem:[%s825_s0 + $0x20] sm:$0xff]  ;;  %180 = vmatpush.msra.mxu1 %v91_v53  ;;  %v24_v58 = vld [vmem:[%s825_s0 + $0x28] sm:$0xff]  ;;  %220 = vmatpush.msra.mxu3 %v92_v55  ;;  %v122_v27 = vld [vmem:[%s825_s0 + $0x338] sm:$0xff] }
  0x1e   :  { %v87_v57 = vld [vmem:[%s825_s0 + $0x220] sm:$0xff]  ;;  %v88_v59 = vld [vmem:[%s825_s0 + $0x228] sm:$0xff]  ;;  %161 = vmatpush.msra.mxu0 %v23_v56  ;;  %201 = vmatpush.msra.mxu2 %v24_v58  ;;  %v53_v28 = vld [vmem:[%s825_s0 + $0x110] sm:$0xff] }
  0x1f   :  { %v19_v60 = vld [vmem:[%s825_s0] sm:$0xff]  ;;  %181 = vmatpush.msra.mxu1 %v87_v57  ;;  %v20_v62 = vld [vmem:[%s825_s0 + $0x8] sm:$0xff]  ;;  %221 = vmatpush.msra.mxu3 %v88_v59  ;;  %v117_v29 = vld [vmem:[%s825_s0 + $0x310] sm:$0xff] }
  0x20   :  { %v83_v61 = vld [vmem:[%s825_s0 + $0x200] sm:$0xff]  ;;  %v84_v63 = vld [vmem:[%s825_s0 + $0x208] sm:$0xff]  ;;  %162 = vmatpush.msra.mxu0 %v19_v60  ;;  %202 = vmatpush.msra.mxu2 %v20_v62  ;;  %v54_v30 = vld [vmem:[%s825_s0 + $0x118] sm:$0xff] }
  0x21   :  { %182 = vmatpush.msra.mxu1 %v83_v61  ;;  %222 = vmatpush.msra.mxu3 %v84_v63  ;;  %v118_v31 = vld [vmem:[%s825_s0 + $0x318] sm:$0xff]  ;;  %v49_v32 = vld [vmem:[%s825_s0 + $0xf0] sm:$0xff]  ;;  %v17_v44 = vld [vmem:[%s826_s1] sm:$0xff] }
  0x22   :  { %227 = vmatpush.msrb.mxu0 %v81_v0  ;;  %267 = vmatpush.msrb.mxu2 %v82_v2  ;;  %v113_v33 = vld [vmem:[%s825_s0 + $0x2f0] sm:$0xff]  ;;  %v50_v34 = vld [vmem:[%s825_s0 + $0xf8] sm:$0xff]  ;;  %v18_v45 = vld [vmem:[%s826_s1 + $0x8] sm:$0xff] }
  0x23   :  { %247 = vmatpush.msrb.mxu1 %v145_v1  ;;  %287 = vmatpush.msrb.mxu3 %v146_v3  ;;  %v114_v35 = vld [vmem:[%s825_s0 + $0x2f8] sm:$0xff]  ;;  %v45_v36 = vld [vmem:[%s825_s0 + $0xd0] sm:$0xff] }
  0x24   :  { %228 = vmatpush.msrb.mxu0 %v77_v4  ;;  %268 = vmatpush.msrb.mxu2 %v78_v6  ;;  %v109_v37 = vld [vmem:[%s825_s0 + $0x2d0] sm:$0xff]  ;;  %v46_v38 = vld [vmem:[%s825_s0 + $0xd8] sm:$0xff] }
  0x25   :  { %248 = vmatpush.msrb.mxu1 %v141_v5  ;;  %288 = vmatpush.msrb.mxu3 %v142_v7  ;;  %v110_v39 = vld [vmem:[%s825_s0 + $0x2d8] sm:$0xff]  ;;  %v41_v40 = vld [vmem:[%s825_s0 + $0xb0] sm:$0xff] }
  0x26   :  { %229 = vmatpush.msrb.mxu0 %v73_v8  ;;  %269 = vmatpush.msrb.mxu2 %v74_v10  ;;  %v105_v41 = vld [vmem:[%s825_s0 + $0x2b0] sm:$0xff]  ;;  %v42_v42 = vld [vmem:[%s825_s0 + $0xb8] sm:$0xff] }
  0x27   :  { %249 = vmatpush.msrb.mxu1 %v137_v9  ;;  %289 = vmatpush.msrb.mxu3 %v138_v11  ;;  %v106_v43 = vld [vmem:[%s825_s0 + $0x2b8] sm:$0xff]  ;;  %v37_v46 = vld [vmem:[%s825_s0 + $0x90] sm:$0xff] }
  0x28   :  { %230 = vmatpush.msrb.mxu0 %v69_v12  ;;  %270 = vmatpush.msrb.mxu2 %v70_v14  ;;  %v101_v47 = vld [vmem:[%s825_s0 + $0x290] sm:$0xff]  ;;  %v38_v48 = vld [vmem:[%s825_s0 + $0x98] sm:$0xff] }
  0x29   :  { %250 = vmatpush.msrb.mxu1 %v133_v13  ;;  %290 = vmatpush.msrb.mxu3 %v134_v15  ;;  %v102_v49 = vld [vmem:[%s825_s0 + $0x298] sm:$0xff]  ;;  %v33_v50 = vld [vmem:[%s825_s0 + $0x70] sm:$0xff] }
  0x2a   :  { %231 = vmatpush.msrb.mxu0 %v65_v16  ;;  %271 = vmatpush.msrb.mxu2 %v66_v18  ;;  %v97_v51 = vld [vmem:[%s825_s0 + $0x270] sm:$0xff]  ;;  %v34_v52 = vld [vmem:[%s825_s0 + $0x78] sm:$0xff] }
  0x2b   :  { %251 = vmatpush.msrb.mxu1 %v129_v17  ;;  %291 = vmatpush.msrb.mxu3 %v130_v19  ;;  %v98_v53 = vld [vmem:[%s825_s0 + $0x278] sm:$0xff]  ;;  %v29_v54 = vld [vmem:[%s825_s0 + $0x50] sm:$0xff] }
  0x2c   :  { %232 = vmatpush.msrb.mxu0 %v61_v20  ;;  %272 = vmatpush.msrb.mxu2 %v62_v22  ;;  %v93_v55 = vld [vmem:[%s825_s0 + $0x250] sm:$0xff]  ;;  %v30_v56 = vld [vmem:[%s825_s0 + $0x58] sm:$0xff] }
  0x2d   :  { %252 = vmatpush.msrb.mxu1 %v125_v21  ;;  %292 = vmatpush.msrb.mxu3 %v126_v23  ;;  %v94_v57 = vld [vmem:[%s825_s0 + $0x258] sm:$0xff]  ;;  %v25_v58 = vld [vmem:[%s825_s0 + $0x30] sm:$0xff] }
  0x2e   :  { %233 = vmatpush.msrb.mxu0 %v57_v24  ;;  %273 = vmatpush.msrb.mxu2 %v58_v26  ;;  %v89_v59 = vld [vmem:[%s825_s0 + $0x230] sm:$0xff]  ;;  %v26_v60 = vld [vmem:[%s825_s0 + $0x38] sm:$0xff]  ;;  %v390_v24 = vmov 512.0  }
  0x2f   :  { %253 = vmatpush.msrb.mxu1 %v121_v25  ;;  %293 = vmatpush.msrb.mxu3 %v122_v27  ;;  %v90_v61 = vld [vmem:[%s825_s0 + $0x238] sm:$0xff]  ;;  %v21_v62 = vld [vmem:[%s825_s0 + $0x10] sm:$0xff]  ;;  %386 = vrcp.f32 %v390_v24 }
  0x30   :  { %234 = vmatpush.msrb.mxu0 %v53_v28  ;;  %274 = vmatpush.msrb.mxu2 %v54_v30  ;;  %v85_v63 = vld [vmem:[%s825_s0 + $0x210] sm:$0xff]  ;;  %v22_v0 = vld [vmem:[%s825_s0 + $0x18] sm:$0xff]  ;;  %v391_v28 = vmov 0  }
  0x31   :  { %254 = vmatpush.msrb.mxu1 %v117_v29  ;;  %294 = vmatpush.msrb.mxu3 %v118_v31  ;;  %v86_v1 = vld [vmem:[%s825_s0 + $0x218] sm:$0xff] }
  0x32   :  { %235 = vmatpush.msrb.mxu0 %v49_v32  ;;  %275 = vmatpush.msrb.mxu2 %v50_v34 }
  0x33   :  { %255 = vmatpush.msrb.mxu1 %v113_v33  ;;  %295 = vmatpush.msrb.mxu3 %v114_v35 }
  0x34   :  { %236 = vmatpush.msrb.mxu0 %v45_v36  ;;  %276 = vmatpush.msrb.mxu2 %v46_v38 }
  0x35   :  { %256 = vmatpush.msrb.mxu1 %v109_v37  ;;  %296 = vmatpush.msrb.mxu3 %v110_v39  ;;  %v387_v25 = vpop.eup %386 }
  0x36   :  { %237 = vmatpush.msrb.mxu0 %v41_v40  ;;  %277 = vmatpush.msrb.mxu2 %v42_v42  ;;  %v313_v26 = vmul.f32 512.0, %v387_v25  ;;  %vm317_vm0 = vweird.f32 %v387_v25 }
  0x37   :  { %257 = vmatpush.msrb.mxu1 %v105_v41  ;;  %297 = vmatpush.msrb.mxu3 %v106_v43 }
  0x38   :  { %203 = vmatmul.f32.vlgmr.msra.gmra.mxu2 %v17_v44  ;;  %223 = vmatmul.f32.vlgmr.msra.gmra.mxu3 %v18_v45  ;;  %v314_v27 = vsub.f32 1.0, %v313_v26 }
  0x39   :  { %238 = vmatpush.msrb.mxu0 %v37_v46  ;;  %258 = vmatpush.msrb.mxu1 %v101_v47 }
  0x3a   :  { %278 = vmatpush.msrb.mxu2 %v38_v48  ;;  %298 = vmatpush.msrb.mxu3 %v102_v49  ;;  %v315_v29 = vmul.f32 %v387_v25, %v314_v27  ;;  %v345_v49 = vld [vmem:[%s828_s3] sm:$0xff] }
  0x3b   :  { %163 = vmatmul.f32.vlgmr.msra.gmra.mxu0 %v17_v44  ;;  %183 = vmatmul.f32.vlgmr.msra.gmra.mxu1 %v18_v45 }
  0x3c   :  { %239 = vmatpush.msrb.mxu0 %v33_v50  ;;  %259 = vmatpush.msrb.mxu1 %v97_v51  ;;  %v316_v30 = vadd.f32 %v387_v25, %v315_v29 }
  0x3d   :  { %279 = vmatpush.msrb.mxu2 %v34_v52  ;;  %299 = vmatpush.msrb.mxu3 %v98_v53 }
  0x3e   :  { %240 = vmatpush.msrb.mxu0 %v29_v54  ;;  %260 = vmatpush.msrb.mxu1 %v93_v55  ;;  %v318_v32 = vsel %vm317_vm0, %v387_v25, %v316_v30 }
  0x3f   :  { %280 = vmatpush.msrb.mxu2 %v30_v56  ;;  %300 = vmatpush.msrb.mxu3 %v94_v57 }
  0x40   :  { %241 = vmatpush.msrb.mxu0 %v25_v58  ;;  %261 = vmatpush.msrb.mxu1 %v89_v59 }
  0x41   :  { %281 = vmatpush.msrb.mxu2 %v26_v60  ;;  %301 = vmatpush.msrb.mxu3 %v90_v61 }
  0x42   :  { %242 = vmatpush.msrb.mxu0 %v21_v62  ;;  %262 = vmatpush.msrb.mxu1 %v85_v63 }
  0x43   :  { %282 = vmatpush.msrb.mxu2 %v22_v0  ;;  %302 = vmatpush.msrb.mxu3 %v86_v1 }
  0x44   :  { %243 = vmatmul.f32.vlgmr.msrb.gmra.mxu0 %v17_v44  ;;  %263 = vmatmul.f32.vlgmr.msrb.gmra.mxu1 %v18_v45 }
  0x45   :  { %283 = vmatmul.f32.vlgmr.msrb.gmra.mxu2 %v17_v44  ;;  %303 = vmatmul.f32.vlgmr.msrb.gmra.mxu3 %v18_v45  ;;  %v332_v44 = vld [vmem:[%s827_s2] sm:$0xff] }
  0x46   :  { %384 = vset.pattern.permute.xlu1 %v391_v28  ;;  %385 = vset.pattern.permute.xlu0 %v391_v28 }
  0xb8   :  { %v164_v2 = vpop.f32.mrf.mxu0  ;;  %v184_v3 = vpop.f32.mrf.mxu1 }
  0xb9   :  { %v185_v8 = vadd.f32 %v184_v3, %v164_v2 }
  0xbb   :  { %v204_v4 = vpop.f32.mrf.mxu2  ;;  %v224_v5 = vpop.f32.mrf.mxu3  ;;  %v320_v16 = vmul.f32 %v185_v8, %v185_v8 }
  0xbc   :  { %v225_v9 = vadd.f32 %v224_v5, %v204_v4 }
  0xbe   :  { %v307_v11 = vadd.f32 %v225_v9, %v185_v8  ;;  %v321_v17 = vmul.f32 %v225_v9, %v225_v9 }
  0xc0   :  { %v324_v21 = vadd.f32 %v321_v17, %v320_v16 }
  0xc1   :  { %v244_v6 = vpop.f32.mrf.mxu0  ;;  %v264_v7 = vpop.f32.mrf.mxu1 }
  0xc2   :  { %v265_v10 = vadd.f32 %v264_v7, %v244_v6 }
  0xc4   :  { %v308_v15 = vadd.f32 %v307_v11, %v265_v10  ;;  %v322_v19 = vmul.f32 %v265_v10, %v265_v10 }
  0xc6   :  { %v325_v22 = vadd.f32 %v324_v21, %v322_v19 }
  0xc8   :  { %v284_v12 = vpop.f32.mrf.mxu2  ;;  %v304_v13 = vpop.f32.mrf.mxu3 }
  0xc9   :  { %v305_v14 = vadd.f32 %v304_v13, %v284_v12 }
  0xcb   :  { %v309_v18 = vadd.f32 %v308_v15, %v305_v14  ;;  %v323_v20 = vmul.f32 %v305_v14, %v305_v14 }
  0xcd   :  { %310 = vadd.xlane.f32.xlu0 %v309_v18  ;;  %v326_v23 = vadd.f32 %v325_v22, %v323_v20 }
  0xd5   :  { %327 = vadd.xlane.f32.xlu0 %v326_v23 }
 0x140   :  { %v311_v31 = vpop.xlane.xlu0 %310 }
 0x141   :  { %v319_v33 = vmul.f32 %v318_v32, %v311_v31 }
 0x143   :  { %v330_v35 = vmul.f32 %v319_v33, %v319_v33 }
 0x148   :  { %v328_v34 = vpop.xlane.xlu0 %327 }
 0x149   :  { %v329_v36 = vmul.f32 %v328_v34, %v318_v32 }
 0x14b   :  { %v331_v37 = vsub.f32 %v329_v36, %v330_v35 }
 0x14d   :  { %v333_v38 = vadd.f32 1e-05, %v331_v37 }
 0x14f   :  { %388 = vrsqrt.f32 %v333_v38  ;;  %vm340_vm2 = vweird.f32 %v333_v38 }
 0x155   :  { %v389_v39 = vpop.eup %388 }
 0x156   :  { %v335_v40 = vmul.f32 %v389_v39, %v333_v38  ;;  %vm341_vm1 = vweird.f32 %v389_v39 }
 0x157   :  { %vm342_vm3 = vmor %vm340_vm2, %vm341_vm1 }
 0x158   :  { %v336_v41 = vmul.f32 %v389_v39, %v335_v40 }
 0x15a   :  { %v337_v42 = vmul.f32 0.5, %v336_v41 }
 0x15c   :  { %v338_v43 = vsub.f32 1.5, %v337_v42 }
 0x15e   :  { %v339_v45 = vmul.f32 %v389_v39, %v338_v43 }
 0x160   :  { %v343_v46 = vsel %vm342_vm3, %v389_v39, %v339_v45 }
 0x161   :  { %v344_v47 = vmul.f32 %v343_v46, %v332_v44 }
 0x163   :  { %350 = vperm.xlu1 %384, %v344_v47   ;;  %v346_v48 = vmul.f32 %v344_v47, %v319_v33 }
 0x165   :  { %v347_v50 = vsub.f32 %v345_v49, %v346_v48 }
 0x16b   :  { %359 = vperm.xlu1 %384, %v347_v50  }
 0x1d5   :  { %v351_v51 = vpop.permute.xlu1 %350 }
 0x1d6   :  { %v353_v52 = vmul.f32 %v351_v51, %v185_v8  ;;  %v354_v53 = vmul.f32 %v351_v51, %v225_v9  ;;  %v355_v54 = vmul.f32 %v351_v51, %v265_v10  ;;  %v356_v55 = vmul.f32 %v351_v51, %v305_v14 }
 0x1dd   :  { %v360_v56 = vpop.permute.xlu1 %359 }
 0x1de   :  { %v362_v57 = vadd.f32 %v360_v56, %v353_v52  ;;  %v363_v58 = vadd.f32 %v360_v56, %v354_v53  ;;  %v364_v59 = vadd.f32 %v360_v56, %v355_v54  ;;  %v365_v60 = vadd.f32 %v360_v56, %v356_v55 }
 0x1e0   :  { %v366_v61 = vmul.f32 0.01, %v362_v57  ;;  %v367_v62 = vmul.f32 0.01, %v363_v58  ;;  %v368_v63 = vmul.f32 0.01, %v364_v59 }
 0x1e1   :  { %v369_v0 = vmul.f32 0.01, %v365_v60 }
 0x1e2   :  { %v370_v1 = vmax.f32 %v362_v57, %v366_v61  ;;  %v371_v2 = vmax.f32 %v363_v58, %v367_v62  ;;  %v372_v3 = vmax.f32 %v364_v59, %v368_v63 }
 0x1e3   :  { %v373_v4 = vmax.f32 %v365_v60, %v369_v0 }
 0x1e4   :  { %374 = vst [vmem:[%s829_s4] sm:$0xff] %v370_v1 }
 0x1e5   :  { %375 = vst [vmem:[%s829_s4 + $0x8] sm:$0xff] %v371_v2 }
 0x1e6   :  { %376 = vst [vmem:[%s829_s4 + $0x10] sm:$0xff] %v372_v3 }
 0x1e7   :  { %377 = vst [vmem:[%s829_s4 + $0x18] sm:$0xff] %v373_v4 }

// kernel: generator_forward.7
= control target key start
LH: loop header
LB: loop body
LE: loop exit
PB: predicated region body
PF: predicated region fallthrough
CT: control target
= control target key end

     0   :  { %vm628_vm0 = vcmask 1043456   ;;  %s1525_s0 = inlined_call_operand.vmem [shape: f32[128,2048], index: 0, kind: input, shape index: {}]   ;;  %s1526_s1 = inlined_call_operand.vmem [shape: f32[3,128], index: 1, kind: input, shape index: {}]   ;;  %s1527_s2 = inlined_call_operand.vmem [shape: f32[3,2048], index: 2, kind: output, shape index: {}]  }
   0x1   :  { %v255_v0 = vld [vmem:[%s1525_s0 + $0x798] sm:$0xff]  ;;  %v254_v1 = vld [vmem:[%s1525_s0 + $0x790] sm:$0xff]  ;;  %v253_v4 = vld [vmem:[%s1525_s0 + $0x788] sm:$0xff] }
   0x2   :  { %v239_v2 = vld [vmem:[%s1525_s0 + $0x718] sm:$0xff]  ;;  %328 = vmatpush.msra.mxu3 %v255_v0  ;;  %308 = vmatpush.msra.mxu2 %v254_v1  ;;  %v238_v3 = vld [vmem:[%s1525_s0 + $0x710] sm:$0xff]  ;;  %v252_v7 = vld [vmem:[%s1525_s0 + $0x780] sm:$0xff] }
   0x3   :  { %v223_v5 = vld [vmem:[%s1525_s0 + $0x698] sm:$0xff]  ;;  %288 = vmatpush.msra.mxu1 %v253_v4  ;;  %v222_v6 = vld [vmem:[%s1525_s0 + $0x690] sm:$0xff]  ;;  %v237_v9 = vld [vmem:[%s1525_s0 + $0x708] sm:$0xff]  ;;  %268 = vmatpush.msra.mxu0 %v252_v7 }
   0x4   :  { %329 = vmatpush.msra.mxu3 %v239_v2  ;;  %309 = vmatpush.msra.mxu2 %v238_v3  ;;  %v207_v8 = vld [vmem:[%s1525_s0 + $0x618] sm:$0xff]  ;;  %v206_v10 = vld [vmem:[%s1525_s0 + $0x610] sm:$0xff]  ;;  %v236_v11 = vld [vmem:[%s1525_s0 + $0x700] sm:$0xff] }
   0x5   :  { %289 = vmatpush.msra.mxu1 %v237_v9  ;;  %v221_v12 = vld [vmem:[%s1525_s0 + $0x688] sm:$0xff]  ;;  %v220_v13 = vld [vmem:[%s1525_s0 + $0x680] sm:$0xff]  ;;  %v191_v15 = vld [vmem:[%s1525_s0 + $0x598] sm:$0xff]  ;;  %269 = vmatpush.msra.mxu0 %v236_v11 }
   0x6   :  { %330 = vmatpush.msra.mxu3 %v223_v5  ;;  %310 = vmatpush.msra.mxu2 %v222_v6  ;;  %v205_v14 = vld [vmem:[%s1525_s0 + $0x608] sm:$0xff]  ;;  %v190_v16 = vld [vmem:[%s1525_s0 + $0x590] sm:$0xff]  ;;  %v204_v17 = vld [vmem:[%s1525_s0 + $0x600] sm:$0xff] }
   0x7   :  { %290 = vmatpush.msra.mxu1 %v221_v12  ;;  %v189_v18 = vld [vmem:[%s1525_s0 + $0x588] sm:$0xff]  ;;  %v175_v19 = vld [vmem:[%s1525_s0 + $0x518] sm:$0xff]  ;;  %270 = vmatpush.msra.mxu0 %v220_v13  ;;  %v174_v20 = vld [vmem:[%s1525_s0 + $0x510] sm:$0xff] }
   0x8   :  { %331 = vmatpush.msra.mxu3 %v207_v8  ;;  %311 = vmatpush.msra.mxu2 %v206_v10  ;;  %v188_v21 = vld [vmem:[%s1525_s0 + $0x580] sm:$0xff]  ;;  %v173_v22 = vld [vmem:[%s1525_s0 + $0x508] sm:$0xff]  ;;  %v159_v23 = vld [vmem:[%s1525_s0 + $0x498] sm:$0xff] }
   0x9   :  { %291 = vmatpush.msra.mxu1 %v205_v14  ;;  %271 = vmatpush.msra.mxu0 %v204_v17  ;;  %v158_v24 = vld [vmem:[%s1525_s0 + $0x490] sm:$0xff]  ;;  %v172_v25 = vld [vmem:[%s1525_s0 + $0x500] sm:$0xff]  ;;  %v157_v26 = vld [vmem:[%s1525_s0 + $0x488] sm:$0xff] }
   0xa   :  { %332 = vmatpush.msra.mxu3 %v191_v15  ;;  %312 = vmatpush.msra.mxu2 %v190_v16  ;;  %v143_v27 = vld [vmem:[%s1525_s0 + $0x418] sm:$0xff]  ;;  %v142_v28 = vld [vmem:[%s1525_s0 + $0x410] sm:$0xff]  ;;  %v156_v29 = vld [vmem:[%s1525_s0 + $0x480] sm:$0xff] }
   0xb   :  { %292 = vmatpush.msra.mxu1 %v189_v18  ;;  %272 = vmatpush.msra.mxu0 %v188_v21  ;;  %v141_v30 = vld [vmem:[%s1525_s0 + $0x408] sm:$0xff]  ;;  %v127_v31 = vld [vmem:[%s1525_s0 + $0x398] sm:$0xff]  ;;  %v126_v32 = vld [vmem:[%s1525_s0 + $0x390] sm:$0xff] }
   0xc   :  { %333 = vmatpush.msra.mxu3 %v175_v19  ;;  %313 = vmatpush.msra.mxu2 %v174_v20  ;;  %v140_v33 = vld [vmem:[%s1525_s0 + $0x400] sm:$0xff]  ;;  %v125_v34 = vld [vmem:[%s1525_s0 + $0x388] sm:$0xff]  ;;  %v111_v35 = vld [vmem:[%s1525_s0 + $0x318] sm:$0xff] }
   0xd   :  { %293 = vmatpush.msra.mxu1 %v173_v22  ;;  %273 = vmatpush.msra.mxu0 %v172_v25  ;;  %v110_v36 = vld [vmem:[%s1525_s0 + $0x310] sm:$0xff]  ;;  %v124_v37 = vld [vmem:[%s1525_s0 + $0x380] sm:$0xff]  ;;  %v109_v38 = vld [vmem:[%s1525_s0 + $0x308] sm:$0xff] }
   0xe   :  { %334 = vmatpush.msra.mxu3 %v159_v23  ;;  %314 = vmatpush.msra.mxu2 %v158_v24  ;;  %v95_v39 = vld [vmem:[%s1525_s0 + $0x298] sm:$0xff]  ;;  %v94_v40 = vld [vmem:[%s1525_s0 + $0x290] sm:$0xff]  ;;  %v108_v41 = vld [vmem:[%s1525_s0 + $0x300] sm:$0xff] }
   0xf   :  { %294 = vmatpush.msra.mxu1 %v157_v26  ;;  %274 = vmatpush.msra.mxu0 %v156_v29  ;;  %v93_v42 = vld [vmem:[%s1525_s0 + $0x288] sm:$0xff]  ;;  %v79_v43 = vld [vmem:[%s1525_s0 + $0x218] sm:$0xff]  ;;  %v78_v44 = vld [vmem:[%s1525_s0 + $0x210] sm:$0xff] }
  0x10   :  { %335 = vmatpush.msra.mxu3 %v143_v27  ;;  %315 = vmatpush.msra.mxu2 %v142_v28  ;;  %v92_v45 = vld [vmem:[%s1525_s0 + $0x280] sm:$0xff]  ;;  %v77_v46 = vld [vmem:[%s1525_s0 + $0x208] sm:$0xff]  ;;  %v63_v47 = vld [vmem:[%s1525_s0 + $0x198] sm:$0xff] }
  0x11   :  { %295 = vmatpush.msra.mxu1 %v141_v30  ;;  %275 = vmatpush.msra.mxu0 %v140_v33  ;;  %v62_v48 = vld [vmem:[%s1525_s0 + $0x190] sm:$0xff]  ;;  %v76_v49 = vld [vmem:[%s1525_s0 + $0x200] sm:$0xff]  ;;  %v61_v50 = vld [vmem:[%s1525_s0 + $0x188] sm:$0xff] }
  0x12   :  { %336 = vmatpush.msra.mxu3 %v127_v31  ;;  %316 = vmatpush.msra.mxu2 %v126_v32  ;;  %v47_v51 = vld [vmem:[%s1525_s0 + $0x118] sm:$0xff]  ;;  %v46_v52 = vld [vmem:[%s1525_s0 + $0x110] sm:$0xff]  ;;  %v60_v53 = vld [vmem:[%s1525_s0 + $0x180] sm:$0xff] }
  0x13   :  { %296 = vmatpush.msra.mxu1 %v125_v34  ;;  %276 = vmatpush.msra.mxu0 %v124_v37  ;;  %v45_v54 = vld [vmem:[%s1525_s0 + $0x108] sm:$0xff]  ;;  %v31_v55 = vld [vmem:[%s1525_s0 + $0x98] sm:$0xff]  ;;  %v30_v56 = vld [vmem:[%s1525_s0 + $0x90] sm:$0xff] }
  0x14   :  { %337 = vmatpush.msra.mxu3 %v111_v35  ;;  %317 = vmatpush.msra.mxu2 %v110_v36  ;;  %v44_v57 = vld [vmem:[%s1525_s0 + $0x100] sm:$0xff]  ;;  %v29_v58 = vld [vmem:[%s1525_s0 + $0x88] sm:$0xff]  ;;  %v15_v59 = vld [vmem:[%s1525_s0 + $0x18] sm:$0xff] }
  0x15   :  { %297 = vmatpush.msra.mxu1 %v109_v38  ;;  %277 = vmatpush.msra.mxu0 %v108_v41  ;;  %v14_v60 = vld [vmem:[%s1525_s0 + $0x10] sm:$0xff]  ;;  %v259_v61 = vld [vmem:[%s1525_s0 + $0x7b8] sm:$0xff]  ;;  %v28_v63 = vld [vmem:[%s1525_s0 + $0x80] sm:$0xff] }
  0x16   :  { %338 = vmatpush.msra.mxu3 %v95_v39  ;;  %318 = vmatpush.msra.mxu2 %v94_v40  ;;  %v258_v62 = vld [vmem:[%s1525_s0 + $0x7b0] sm:$0xff]  ;;  %v13_v0 = vld [vmem:[%s1525_s0 + $0x8] sm:$0xff]  ;;  %v243_v1 = vld [vmem:[%s1525_s0 + $0x738] sm:$0xff] }
  0x17   :  { %298 = vmatpush.msra.mxu1 %v93_v42  ;;  %278 = vmatpush.msra.mxu0 %v92_v45  ;;  %v242_v2 = vld [vmem:[%s1525_s0 + $0x730] sm:$0xff]  ;;  %v257_v3 = vld [vmem:[%s1525_s0 + $0x7a8] sm:$0xff]  ;;  %v12_v4 = vld [vmem:[%s1525_s0] sm:$0xff] }
  0x18   :  { %339 = vmatpush.msra.mxu3 %v79_v43  ;;  %319 = vmatpush.msra.mxu2 %v78_v44  ;;  %v227_v5 = vld [vmem:[%s1525_s0 + $0x6b8] sm:$0xff]  ;;  %v226_v6 = vld [vmem:[%s1525_s0 + $0x6b0] sm:$0xff]  ;;  %v256_v7 = vld [vmem:[%s1525_s0 + $0x7a0] sm:$0xff] }
  0x19   :  { %299 = vmatpush.msra.mxu1 %v77_v46  ;;  %279 = vmatpush.msra.mxu0 %v76_v49  ;;  %v241_v8 = vld [vmem:[%s1525_s0 + $0x728] sm:$0xff]  ;;  %v211_v9 = vld [vmem:[%s1525_s0 + $0x638] sm:$0xff]  ;;  %v210_v10 = vld [vmem:[%s1525_s0 + $0x630] sm:$0xff] }
  0x1a   :  { %340 = vmatpush.msra.mxu3 %v63_v47  ;;  %320 = vmatpush.msra.mxu2 %v62_v48  ;;  %v240_v11 = vld [vmem:[%s1525_s0 + $0x720] sm:$0xff]  ;;  %v225_v12 = vld [vmem:[%s1525_s0 + $0x6a8] sm:$0xff]  ;;  %v195_v13 = vld [vmem:[%s1525_s0 + $0x5b8] sm:$0xff] }
  0x1b   :  { %300 = vmatpush.msra.mxu1 %v61_v50  ;;  %280 = vmatpush.msra.mxu0 %v60_v53  ;;  %v194_v14 = vld [vmem:[%s1525_s0 + $0x5b0] sm:$0xff]  ;;  %v224_v15 = vld [vmem:[%s1525_s0 + $0x6a0] sm:$0xff]  ;;  %v209_v16 = vld [vmem:[%s1525_s0 + $0x628] sm:$0xff] }
  0x1c   :  { %341 = vmatpush.msra.mxu3 %v47_v51  ;;  %321 = vmatpush.msra.mxu2 %v46_v52  ;;  %v179_v17 = vld [vmem:[%s1525_s0 + $0x538] sm:$0xff]  ;;  %v178_v18 = vld [vmem:[%s1525_s0 + $0x530] sm:$0xff]  ;;  %v208_v19 = vld [vmem:[%s1525_s0 + $0x620] sm:$0xff] }
  0x1d   :  { %301 = vmatpush.msra.mxu1 %v45_v54  ;;  %281 = vmatpush.msra.mxu0 %v44_v57  ;;  %v193_v20 = vld [vmem:[%s1525_s0 + $0x5a8] sm:$0xff]  ;;  %v163_v21 = vld [vmem:[%s1525_s0 + $0x4b8] sm:$0xff]  ;;  %v162_v22 = vld [vmem:[%s1525_s0 + $0x4b0] sm:$0xff] }
  0x1e   :  { %342 = vmatpush.msra.mxu3 %v31_v55  ;;  %322 = vmatpush.msra.mxu2 %v30_v56  ;;  %v192_v23 = vld [vmem:[%s1525_s0 + $0x5a0] sm:$0xff]  ;;  %v177_v24 = vld [vmem:[%s1525_s0 + $0x528] sm:$0xff]  ;;  %v147_v25 = vld [vmem:[%s1525_s0 + $0x438] sm:$0xff] }
  0x1f   :  { %302 = vmatpush.msra.mxu1 %v29_v58  ;;  %282 = vmatpush.msra.mxu0 %v28_v63  ;;  %v146_v26 = vld [vmem:[%s1525_s0 + $0x430] sm:$0xff]  ;;  %v176_v27 = vld [vmem:[%s1525_s0 + $0x520] sm:$0xff]  ;;  %v161_v28 = vld [vmem:[%s1525_s0 + $0x4a8] sm:$0xff] }
  0x20   :  { %343 = vmatpush.msra.mxu3 %v15_v59  ;;  %323 = vmatpush.msra.mxu2 %v14_v60  ;;  %v131_v29 = vld [vmem:[%s1525_s0 + $0x3b8] sm:$0xff]  ;;  %v130_v30 = vld [vmem:[%s1525_s0 + $0x3b0] sm:$0xff]  ;;  %v160_v31 = vld [vmem:[%s1525_s0 + $0x4a0] sm:$0xff] }
  0x21   :  { %303 = vmatpush.msra.mxu1 %v13_v0  ;;  %283 = vmatpush.msra.mxu0 %v12_v4  ;;  %v145_v32 = vld [vmem:[%s1525_s0 + $0x428] sm:$0xff]  ;;  %v115_v33 = vld [vmem:[%s1525_s0 + $0x338] sm:$0xff]  ;;  %v114_v34 = vld [vmem:[%s1525_s0 + $0x330] sm:$0xff] }
  0x22   :  { %408 = vmatpush.msrb.mxu3 %v259_v61  ;;  %388 = vmatpush.msrb.mxu2 %v258_v62  ;;  %v144_v35 = vld [vmem:[%s1525_s0 + $0x420] sm:$0xff]  ;;  %v129_v36 = vld [vmem:[%s1525_s0 + $0x3a8] sm:$0xff]  ;;  %v99_v37 = vld [vmem:[%s1525_s0 + $0x2b8] sm:$0xff] }
  0x23   :  { %368 = vmatpush.msrb.mxu1 %v257_v3  ;;  %348 = vmatpush.msrb.mxu0 %v256_v7  ;;  %v98_v38 = vld [vmem:[%s1525_s0 + $0x2b0] sm:$0xff]  ;;  %v128_v39 = vld [vmem:[%s1525_s0 + $0x3a0] sm:$0xff]  ;;  %v113_v40 = vld [vmem:[%s1525_s0 + $0x328] sm:$0xff] }
  0x24   :  { %409 = vmatpush.msrb.mxu3 %v243_v1  ;;  %389 = vmatpush.msrb.mxu2 %v242_v2  ;;  %v83_v41 = vld [vmem:[%s1525_s0 + $0x238] sm:$0xff]  ;;  %v82_v42 = vld [vmem:[%s1525_s0 + $0x230] sm:$0xff]  ;;  %v112_v43 = vld [vmem:[%s1525_s0 + $0x320] sm:$0xff] }
  0x25   :  { %369 = vmatpush.msrb.mxu1 %v241_v8  ;;  %349 = vmatpush.msrb.mxu0 %v240_v11  ;;  %v97_v44 = vld [vmem:[%s1525_s0 + $0x2a8] sm:$0xff]  ;;  %v67_v45 = vld [vmem:[%s1525_s0 + $0x1b8] sm:$0xff]  ;;  %v66_v46 = vld [vmem:[%s1525_s0 + $0x1b0] sm:$0xff] }
  0x26   :  { %410 = vmatpush.msrb.mxu3 %v227_v5  ;;  %390 = vmatpush.msrb.mxu2 %v226_v6  ;;  %v96_v47 = vld [vmem:[%s1525_s0 + $0x2a0] sm:$0xff]  ;;  %v81_v48 = vld [vmem:[%s1525_s0 + $0x228] sm:$0xff]  ;;  %v51_v49 = vld [vmem:[%s1525_s0 + $0x138] sm:$0xff] }
  0x27   :  { %370 = vmatpush.msrb.mxu1 %v225_v12  ;;  %350 = vmatpush.msrb.mxu0 %v224_v15  ;;  %v50_v50 = vld [vmem:[%s1525_s0 + $0x130] sm:$0xff]  ;;  %v80_v51 = vld [vmem:[%s1525_s0 + $0x220] sm:$0xff]  ;;  %v65_v52 = vld [vmem:[%s1525_s0 + $0x1a8] sm:$0xff] }
  0x28   :  { %411 = vmatpush.msrb.mxu3 %v211_v9  ;;  %391 = vmatpush.msrb.mxu2 %v210_v10  ;;  %v35_v53 = vld [vmem:[%s1525_s0 + $0xb8] sm:$0xff]  ;;  %v34_v54 = vld [vmem:[%s1525_s0 + $0xb0] sm:$0xff]  ;;  %v1064_v55 = vld [vmem:[%s1526_s1] sm:$0x7] }
  0x29   :  { %371 = vmatpush.msrb.mxu1 %v209_v16  ;;  %351 = vmatpush.msrb.mxu0 %v208_v19  ;;  %v64_v56 = vld [vmem:[%s1525_s0 + $0x1a0] sm:$0xff]  ;;  %v19_v57 = vld [vmem:[%s1525_s0 + $0x38] sm:$0xff]  ;;  %v49_v58 = vld [vmem:[%s1525_s0 + $0x128] sm:$0xff] }
  0x2a   :  { %412 = vmatpush.msrb.mxu3 %v195_v13  ;;  %392 = vmatpush.msrb.mxu2 %v194_v14  ;;  %v263_v59 = vld [vmem:[%s1525_s0 + $0x7d8] sm:$0xff]  ;;  %v18_v60 = vld [vmem:[%s1525_s0 + $0x30] sm:$0xff]  ;;  %v48_v61 = vld [vmem:[%s1525_s0 + $0x120] sm:$0xff] }
  0x2b   :  { %372 = vmatpush.msrb.mxu1 %v193_v20  ;;  %352 = vmatpush.msrb.mxu0 %v192_v23  ;;  %v262_v62 = vld [vmem:[%s1525_s0 + $0x7d0] sm:$0xff]  ;;  %v247_v63 = vld [vmem:[%s1525_s0 + $0x758] sm:$0xff]  ;;  %v33_v0 = vld [vmem:[%s1525_s0 + $0xa8] sm:$0xff] }
  0x2c   :  { %413 = vmatpush.msrb.mxu3 %v179_v17  ;;  %393 = vmatpush.msrb.mxu2 %v178_v18  ;;  %v32_v1 = vld [vmem:[%s1525_s0 + $0xa0] sm:$0xff]  ;;  %v246_v2 = vld [vmem:[%s1525_s0 + $0x750] sm:$0xff]  ;;  %v231_v3 = vld [vmem:[%s1525_s0 + $0x6d8] sm:$0xff] }
  0x2d   :  { %373 = vmatpush.msrb.mxu1 %v177_v24  ;;  %353 = vmatpush.msrb.mxu0 %v176_v27  ;;  %v17_v4 = vld [vmem:[%s1525_s0 + $0x28] sm:$0xff]  ;;  %v16_v5 = vld [vmem:[%s1525_s0 + $0x20] sm:$0xff]  ;;  %v230_v6 = vld [vmem:[%s1525_s0 + $0x6d0] sm:$0xff] }
  0x2e   :  { %414 = vmatpush.msrb.mxu3 %v163_v21  ;;  %394 = vmatpush.msrb.mxu2 %v162_v22  ;;  %v261_v7 = vld [vmem:[%s1525_s0 + $0x7c8] sm:$0xff]  ;;  %v215_v8 = vld [vmem:[%s1525_s0 + $0x658] sm:$0xff]  ;;  %v214_v9 = vld [vmem:[%s1525_s0 + $0x650] sm:$0xff] }
  0x2f   :  { %374 = vmatpush.msrb.mxu1 %v161_v28  ;;  %354 = vmatpush.msrb.mxu0 %v160_v31  ;;  %v260_v10 = vld [vmem:[%s1525_s0 + $0x7c0] sm:$0xff]  ;;  %v245_v11 = vld [vmem:[%s1525_s0 + $0x748] sm:$0xff]  ;;  %v199_v12 = vld [vmem:[%s1525_s0 + $0x5d8] sm:$0xff] }
  0x30   :  { %415 = vmatpush.msrb.mxu3 %v147_v25  ;;  %395 = vmatpush.msrb.mxu2 %v146_v26  ;;  %v198_v13 = vld [vmem:[%s1525_s0 + $0x5d0] sm:$0xff]  ;;  %v244_v14 = vld [vmem:[%s1525_s0 + $0x740] sm:$0xff]  ;;  %v229_v15 = vld [vmem:[%s1525_s0 + $0x6c8] sm:$0xff] }
  0x31   :  { %375 = vmatpush.msrb.mxu1 %v145_v32  ;;  %355 = vmatpush.msrb.mxu0 %v144_v35  ;;  %v183_v16 = vld [vmem:[%s1525_s0 + $0x558] sm:$0xff]  ;;  %v182_v17 = vld [vmem:[%s1525_s0 + $0x550] sm:$0xff]  ;;  %v228_v18 = vld [vmem:[%s1525_s0 + $0x6c0] sm:$0xff] }
  0x32   :  { %416 = vmatpush.msrb.mxu3 %v131_v29  ;;  %396 = vmatpush.msrb.mxu2 %v130_v30  ;;  %v213_v19 = vld [vmem:[%s1525_s0 + $0x648] sm:$0xff]  ;;  %v167_v20 = vld [vmem:[%s1525_s0 + $0x4d8] sm:$0xff]  ;;  %v166_v21 = vld [vmem:[%s1525_s0 + $0x4d0] sm:$0xff] }
  0x33   :  { %376 = vmatpush.msrb.mxu1 %v129_v36  ;;  %356 = vmatpush.msrb.mxu0 %v128_v39  ;;  %v212_v22 = vld [vmem:[%s1525_s0 + $0x640] sm:$0xff]  ;;  %v197_v23 = vld [vmem:[%s1525_s0 + $0x5c8] sm:$0xff]  ;;  %v151_v24 = vld [vmem:[%s1525_s0 + $0x458] sm:$0xff] }
  0x34   :  { %417 = vmatpush.msrb.mxu3 %v115_v33  ;;  %397 = vmatpush.msrb.mxu2 %v114_v34  ;;  %v150_v25 = vld [vmem:[%s1525_s0 + $0x450] sm:$0xff]  ;;  %v196_v26 = vld [vmem:[%s1525_s0 + $0x5c0] sm:$0xff]  ;;  %v181_v27 = vld [vmem:[%s1525_s0 + $0x548] sm:$0xff] }
  0x35   :  { %377 = vmatpush.msrb.mxu1 %v113_v40  ;;  %357 = vmatpush.msrb.mxu0 %v112_v43  ;;  %v135_v28 = vld [vmem:[%s1525_s0 + $0x3d8] sm:$0xff]  ;;  %v134_v29 = vld [vmem:[%s1525_s0 + $0x3d0] sm:$0xff]  ;;  %v180_v30 = vld [vmem:[%s1525_s0 + $0x540] sm:$0xff] }
  0x36   :  { %418 = vmatpush.msrb.mxu3 %v99_v37  ;;  %398 = vmatpush.msrb.mxu2 %v98_v38  ;;  %v165_v31 = vld [vmem:[%s1525_s0 + $0x4c8] sm:$0xff]  ;;  %v119_v32 = vld [vmem:[%s1525_s0 + $0x358] sm:$0xff]  ;;  %v118_v33 = vld [vmem:[%s1525_s0 + $0x350] sm:$0xff] }
  0x37   :  { %378 = vmatpush.msrb.mxu1 %v97_v44  ;;  %358 = vmatpush.msrb.mxu0 %v96_v47  ;;  %v164_v34 = vld [vmem:[%s1525_s0 + $0x4c0] sm:$0xff]  ;;  %v149_v35 = vld [vmem:[%s1525_s0 + $0x448] sm:$0xff]  ;;  %v103_v36 = vld [vmem:[%s1525_s0 + $0x2d8] sm:$0xff] }
  0x38   :  { %419 = vmatpush.msrb.mxu3 %v83_v41  ;;  %399 = vmatpush.msrb.mxu2 %v82_v42  ;;  %v102_v37 = vld [vmem:[%s1525_s0 + $0x2d0] sm:$0xff]  ;;  %v148_v38 = vld [vmem:[%s1525_s0 + $0x440] sm:$0xff]  ;;  %v133_v39 = vld [vmem:[%s1525_s0 + $0x3c8] sm:$0xff] }
  0x39   :  { %379 = vmatpush.msrb.mxu1 %v81_v48  ;;  %359 = vmatpush.msrb.mxu0 %v80_v51  ;;  %v87_v40 = vld [vmem:[%s1525_s0 + $0x258] sm:$0xff]  ;;  %v86_v41 = vld [vmem:[%s1525_s0 + $0x250] sm:$0xff]  ;;  %v132_v42 = vld [vmem:[%s1525_s0 + $0x3c0] sm:$0xff] }
  0x3a   :  { %420 = vmatpush.msrb.mxu3 %v67_v45  ;;  %400 = vmatpush.msrb.mxu2 %v66_v46  ;;  %v117_v43 = vld [vmem:[%s1525_s0 + $0x348] sm:$0xff]  ;;  %v71_v44 = vld [vmem:[%s1525_s0 + $0x1d8] sm:$0xff]  ;;  %v70_v45 = vld [vmem:[%s1525_s0 + $0x1d0] sm:$0xff] }
  0x3b   :  { %380 = vmatpush.msrb.mxu1 %v65_v52  ;;  %344 = vmatmul.f32.vlgmr.msra.gmra.mxu3 %v1064_v55  ;;  %v116_v46 = vld [vmem:[%s1525_s0 + $0x340] sm:$0xff]  ;;  %v101_v47 = vld [vmem:[%s1525_s0 + $0x2c8] sm:$0xff]  ;;  %v55_v48 = vld [vmem:[%s1525_s0 + $0x158] sm:$0xff] }
  0x3c   :  { %421 = vmatpush.msrb.mxu3 %v51_v49  ;;  %401 = vmatpush.msrb.mxu2 %v50_v50  ;;  %v54_v49 = vld [vmem:[%s1525_s0 + $0x150] sm:$0xff]  ;;  %v100_v50 = vld [vmem:[%s1525_s0 + $0x2c0] sm:$0xff]  ;;  %v85_v51 = vld [vmem:[%s1525_s0 + $0x248] sm:$0xff] }
  0x3d   :  { %360 = vmatpush.msrb.mxu0 %v64_v56  ;;  %381 = vmatpush.msrb.mxu1 %v49_v58  ;;  %v39_v52 = vld [vmem:[%s1525_s0 + $0xd8] sm:$0xff]  ;;  %v69_v56 = vld [vmem:[%s1525_s0 + $0x1c8] sm:$0xff]  ;;  %v22_v58 = vld [vmem:[%s1525_s0 + $0x50] sm:$0xff] }
  0x3e   :  { %422 = vmatpush.msrb.mxu3 %v35_v53  ;;  %402 = vmatpush.msrb.mxu2 %v34_v54  ;;  %v38_v53 = vld [vmem:[%s1525_s0 + $0xd0] sm:$0xff]  ;;  %v84_v54 = vld [vmem:[%s1525_s0 + $0x240] sm:$0xff] }
  0x3f   :  { %324 = vmatmul.f32.vlgmr.msra.gmra.mxu2 %v1064_v55  ;;  %361 = vmatpush.msrb.mxu0 %v48_v61  ;;  %v53_v61 = vld [vmem:[%s1525_s0 + $0x148] sm:$0xff] }
  0x40   :  { %423 = vmatpush.msrb.mxu3 %v19_v57  ;;  %403 = vmatpush.msrb.mxu2 %v18_v60  ;;  %v23_v57 = vld [vmem:[%s1525_s0 + $0x58] sm:$0xff] }
  0x41   :  { %382 = vmatpush.msrb.mxu1 %v33_v0  ;;  %362 = vmatpush.msrb.mxu0 %v32_v1  ;;  %v267_v60 = vld [vmem:[%s1525_s0 + $0x7f8] sm:$0xff]  ;;  %v37_v1 = vld [vmem:[%s1525_s0 + $0xc8] sm:$0xff] }
  0x42   :  { %488 = vmatpush.msra.mxu3 %v263_v59  ;;  %468 = vmatpush.msra.mxu2 %v262_v62  ;;  %v68_v59 = vld [vmem:[%s1525_s0 + $0x1c0] sm:$0xff]  ;;  %v251_v0 = vld [vmem:[%s1525_s0 + $0x778] sm:$0xff] }
  0x43   :  { %383 = vmatpush.msrb.mxu1 %v17_v4  ;;  %363 = vmatpush.msrb.mxu0 %v16_v5  ;;  %v52_v62 = vld [vmem:[%s1525_s0 + $0x140] sm:$0xff]  ;;  %v235_v4 = vld [vmem:[%s1525_s0 + $0x6f8] sm:$0xff]  ;;  %v21_v5 = vld [vmem:[%s1525_s0 + $0x48] sm:$0xff] }
  0x44   :  { %489 = vmatpush.msra.mxu3 %v247_v63  ;;  %469 = vmatpush.msra.mxu2 %v246_v2  ;;  %v266_v63 = vld [vmem:[%s1525_s0 + $0x7f0] sm:$0xff]  ;;  %v36_v2 = vld [vmem:[%s1525_s0 + $0xc0] sm:$0xff] }
  0x45   :  { %304 = vmatmul.f32.vlgmr.msra.gmra.mxu1 %v1064_v55  ;;  %284 = vmatmul.f32.vlgmr.msra.gmra.mxu0 %v1064_v55 }
  0x46   :  { %490 = vmatpush.msra.mxu3 %v231_v3  ;;  %470 = vmatpush.msra.mxu2 %v230_v6  ;;  %v250_v3 = vld [vmem:[%s1525_s0 + $0x770] sm:$0xff]  ;;  %v20_v6 = vld [vmem:[%s1525_s0 + $0x40] sm:$0xff] }
  0x47   :  { %448 = vmatpush.msra.mxu1 %v261_v7  ;;  %428 = vmatpush.msra.mxu0 %v260_v10  ;;  %v234_v7 = vld [vmem:[%s1525_s0 + $0x6f0] sm:$0xff] }
  0x48   :  { %491 = vmatpush.msra.mxu3 %v215_v8  ;;  %471 = vmatpush.msra.mxu2 %v214_v9  ;;  %v265_v8 = vld [vmem:[%s1525_s0 + $0x7e8] sm:$0xff]  ;;  %v219_v9 = vld [vmem:[%s1525_s0 + $0x678] sm:$0xff]  ;;  %v218_v10 = vld [vmem:[%s1525_s0 + $0x670] sm:$0xff] }
  0x49   :  { %449 = vmatpush.msra.mxu1 %v245_v11  ;;  %429 = vmatpush.msra.mxu0 %v244_v14  ;;  %v264_v11 = vld [vmem:[%s1525_s0 + $0x7e0] sm:$0xff]  ;;  %v202_v14 = vld [vmem:[%s1525_s0 + $0x5f0] sm:$0xff] }
  0x4a   :  { %492 = vmatpush.msra.mxu3 %v199_v12  ;;  %472 = vmatpush.msra.mxu2 %v198_v13  ;;  %v249_v12 = vld [vmem:[%s1525_s0 + $0x768] sm:$0xff]  ;;  %v203_v13 = vld [vmem:[%s1525_s0 + $0x5f8] sm:$0xff] }
  0x4b   :  { %450 = vmatpush.msra.mxu1 %v229_v15  ;;  %430 = vmatpush.msra.mxu0 %v228_v18  ;;  %v248_v15 = vld [vmem:[%s1525_s0 + $0x760] sm:$0xff]  ;;  %v186_v18 = vld [vmem:[%s1525_s0 + $0x570] sm:$0xff] }
  0x4c   :  { %493 = vmatpush.msra.mxu3 %v183_v16  ;;  %473 = vmatpush.msra.mxu2 %v182_v17  ;;  %v233_v16 = vld [vmem:[%s1525_s0 + $0x6e8] sm:$0xff]  ;;  %v187_v17 = vld [vmem:[%s1525_s0 + $0x578] sm:$0xff] }
  0x4d   :  { %451 = vmatpush.msra.mxu1 %v213_v19  ;;  %431 = vmatpush.msra.mxu0 %v212_v22  ;;  %v232_v19 = vld [vmem:[%s1525_s0 + $0x6e0] sm:$0xff]  ;;  %v170_v22 = vld [vmem:[%s1525_s0 + $0x4f0] sm:$0xff] }
  0x4e   :  { %494 = vmatpush.msra.mxu3 %v167_v20  ;;  %474 = vmatpush.msra.mxu2 %v166_v21  ;;  %v217_v20 = vld [vmem:[%s1525_s0 + $0x668] sm:$0xff]  ;;  %v171_v21 = vld [vmem:[%s1525_s0 + $0x4f8] sm:$0xff] }
  0x4f   :  { %452 = vmatpush.msra.mxu1 %v197_v23  ;;  %432 = vmatpush.msra.mxu0 %v196_v26  ;;  %v216_v23 = vld [vmem:[%s1525_s0 + $0x660] sm:$0xff]  ;;  %v154_v26 = vld [vmem:[%s1525_s0 + $0x470] sm:$0xff] }
  0x50   :  { %495 = vmatpush.msra.mxu3 %v151_v24  ;;  %475 = vmatpush.msra.mxu2 %v150_v25  ;;  %v201_v24 = vld [vmem:[%s1525_s0 + $0x5e8] sm:$0xff]  ;;  %v155_v25 = vld [vmem:[%s1525_s0 + $0x478] sm:$0xff] }
  0x51   :  { %453 = vmatpush.msra.mxu1 %v181_v27  ;;  %433 = vmatpush.msra.mxu0 %v180_v30  ;;  %v200_v27 = vld [vmem:[%s1525_s0 + $0x5e0] sm:$0xff]  ;;  %v138_v30 = vld [vmem:[%s1525_s0 + $0x3f0] sm:$0xff] }
  0x52   :  { %496 = vmatpush.msra.mxu3 %v135_v28  ;;  %476 = vmatpush.msra.mxu2 %v134_v29  ;;  %v185_v28 = vld [vmem:[%s1525_s0 + $0x568] sm:$0xff]  ;;  %v139_v29 = vld [vmem:[%s1525_s0 + $0x3f8] sm:$0xff] }
  0x53   :  { %454 = vmatpush.msra.mxu1 %v165_v31  ;;  %434 = vmatpush.msra.mxu0 %v164_v34  ;;  %v184_v31 = vld [vmem:[%s1525_s0 + $0x560] sm:$0xff]  ;;  %v122_v34 = vld [vmem:[%s1525_s0 + $0x370] sm:$0xff] }
  0x54   :  { %497 = vmatpush.msra.mxu3 %v119_v32  ;;  %477 = vmatpush.msra.mxu2 %v118_v33  ;;  %v169_v32 = vld [vmem:[%s1525_s0 + $0x4e8] sm:$0xff]  ;;  %v123_v33 = vld [vmem:[%s1525_s0 + $0x378] sm:$0xff] }
  0x55   :  { %455 = vmatpush.msra.mxu1 %v149_v35  ;;  %435 = vmatpush.msra.mxu0 %v148_v38  ;;  %v168_v35 = vld [vmem:[%s1525_s0 + $0x4e0] sm:$0xff]  ;;  %v106_v38 = vld [vmem:[%s1525_s0 + $0x2f0] sm:$0xff] }
  0x56   :  { %498 = vmatpush.msra.mxu3 %v103_v36  ;;  %478 = vmatpush.msra.mxu2 %v102_v37  ;;  %v153_v36 = vld [vmem:[%s1525_s0 + $0x468] sm:$0xff]  ;;  %v107_v37 = vld [vmem:[%s1525_s0 + $0x2f8] sm:$0xff] }
  0x57   :  { %456 = vmatpush.msra.mxu1 %v133_v39  ;;  %436 = vmatpush.msra.mxu0 %v132_v42  ;;  %v152_v39 = vld [vmem:[%s1525_s0 + $0x460] sm:$0xff]  ;;  %v90_v42 = vld [vmem:[%s1525_s0 + $0x270] sm:$0xff] }
  0x58   :  { %499 = vmatpush.msra.mxu3 %v87_v40  ;;  %479 = vmatpush.msra.mxu2 %v86_v41  ;;  %v137_v40 = vld [vmem:[%s1525_s0 + $0x3e8] sm:$0xff]  ;;  %v91_v41 = vld [vmem:[%s1525_s0 + $0x278] sm:$0xff] }
  0x59   :  { %457 = vmatpush.msra.mxu1 %v117_v43  ;;  %437 = vmatpush.msra.mxu0 %v116_v46  ;;  %v136_v43 = vld [vmem:[%s1525_s0 + $0x3e0] sm:$0xff] }
  0x5a   :  { %500 = vmatpush.msra.mxu3 %v71_v44  ;;  %480 = vmatpush.msra.mxu2 %v70_v45  ;;  %v121_v44 = vld [vmem:[%s1525_s0 + $0x368] sm:$0xff]  ;;  %v75_v45 = vld [vmem:[%s1525_s0 + $0x1f8] sm:$0xff]  ;;  %v120_v46 = vld [vmem:[%s1525_s0 + $0x360] sm:$0xff] }
  0x5b   :  { %458 = vmatpush.msra.mxu1 %v101_v47  ;;  %438 = vmatpush.msra.mxu0 %v100_v50  ;;  %v105_v47 = vld [vmem:[%s1525_s0 + $0x2e8] sm:$0xff]  ;;  %v104_v50 = vld [vmem:[%s1525_s0 + $0x2e0] sm:$0xff] }
  0x5c   :  { %501 = vmatpush.msra.mxu3 %v55_v48  ;;  %481 = vmatpush.msra.mxu2 %v54_v49  ;;  %v74_v48 = vld [vmem:[%s1525_s0 + $0x1f0] sm:$0xff]  ;;  %v59_v49 = vld [vmem:[%s1525_s0 + $0x178] sm:$0xff] }
  0x5d   :  { %459 = vmatpush.msra.mxu1 %v85_v51  ;;  %439 = vmatpush.msra.mxu0 %v84_v54  ;;  %v89_v51 = vld [vmem:[%s1525_s0 + $0x268] sm:$0xff]  ;;  %v88_v54 = vld [vmem:[%s1525_s0 + $0x260] sm:$0xff] }
  0x5e   :  { %502 = vmatpush.msra.mxu3 %v39_v52  ;;  %482 = vmatpush.msra.mxu2 %v38_v53  ;;  %v58_v52 = vld [vmem:[%s1525_s0 + $0x170] sm:$0xff]  ;;  %v43_v53 = vld [vmem:[%s1525_s0 + $0xf8] sm:$0xff] }
  0x5f   :  { %460 = vmatpush.msra.mxu1 %v69_v56  ;;  %424 = vmatmul.f32.vlgmr.msrb.gmra.mxu3 %v1064_v55  ;;  %v73_v56 = vld [vmem:[%s1525_s0 + $0x1e8] sm:$0xff] }
  0x60   :  { %503 = vmatpush.msra.mxu3 %v23_v57  ;;  %483 = vmatpush.msra.mxu2 %v22_v58  ;;  %v42_v57 = vld [vmem:[%s1525_s0 + $0xf0] sm:$0xff]  ;;  %v27_v58 = vld [vmem:[%s1525_s0 + $0x78] sm:$0xff] }
  0x61   :  { %440 = vmatpush.msra.mxu0 %v68_v59  ;;  %461 = vmatpush.msra.mxu1 %v53_v61  ;;  %v72_v59 = vld [vmem:[%s1525_s0 + $0x1e0] sm:$0xff]  ;;  %v26_v61 = vld [vmem:[%s1525_s0 + $0x70] sm:$0xff] }
  0x62   :  { %568 = vmatpush.msrb.mxu3 %v267_v60  ;;  %404 = vmatmul.f32.vlgmr.msrb.gmra.mxu2 %v1064_v55  ;;  %v57_v60 = vld [vmem:[%s1525_s0 + $0x168] sm:$0xff] }
  0x63   :  { %441 = vmatpush.msra.mxu0 %v52_v62  ;;  %548 = vmatpush.msrb.mxu2 %v266_v63  ;;  %v56_v62 = vld [vmem:[%s1525_s0 + $0x160] sm:$0xff]  ;;  %v41_v63 = vld [vmem:[%s1525_s0 + $0xe8] sm:$0xff] }
  0x64   :  { %569 = vmatpush.msrb.mxu3 %v251_v0  ;;  %462 = vmatpush.msra.mxu1 %v37_v1  ;;  %v40_v0 = vld [vmem:[%s1525_s0 + $0xe0] sm:$0xff]  ;;  %v25_v1 = vld [vmem:[%s1525_s0 + $0x68] sm:$0xff] }
  0x65   :  { %442 = vmatpush.msra.mxu0 %v36_v2  ;;  %549 = vmatpush.msrb.mxu2 %v250_v3  ;;  %v24_v2 = vld [vmem:[%s1525_s0 + $0x60] sm:$0xff] }
  0x66   :  { %570 = vmatpush.msrb.mxu3 %v235_v4  ;;  %463 = vmatpush.msra.mxu1 %v21_v5 }
  0x67   :  { %443 = vmatpush.msra.mxu0 %v20_v6  ;;  %384 = vmatmul.f32.vlgmr.msrb.gmra.mxu1 %v1064_v55 }
  0x68   :  { %550 = vmatpush.msrb.mxu2 %v234_v7  ;;  %528 = vmatpush.msrb.mxu1 %v265_v8 }
  0x69   :  { %571 = vmatpush.msrb.mxu3 %v219_v9  ;;  %364 = vmatmul.f32.vlgmr.msrb.gmra.mxu0 %v1064_v55 }
  0x6a   :  { %551 = vmatpush.msrb.mxu2 %v218_v10  ;;  %508 = vmatpush.msrb.mxu0 %v264_v11 }
  0x6b   :  { %529 = vmatpush.msrb.mxu1 %v249_v12  ;;  %572 = vmatpush.msrb.mxu3 %v203_v13 }
  0x6c   :  { %552 = vmatpush.msrb.mxu2 %v202_v14  ;;  %509 = vmatpush.msrb.mxu0 %v248_v15 }
  0x6d   :  { %530 = vmatpush.msrb.mxu1 %v233_v16  ;;  %573 = vmatpush.msrb.mxu3 %v187_v17 }
  0x6e   :  { %553 = vmatpush.msrb.mxu2 %v186_v18  ;;  %510 = vmatpush.msrb.mxu0 %v232_v19 }
  0x6f   :  { %531 = vmatpush.msrb.mxu1 %v217_v20  ;;  %574 = vmatpush.msrb.mxu3 %v171_v21 }
  0x70   :  { %554 = vmatpush.msrb.mxu2 %v170_v22  ;;  %511 = vmatpush.msrb.mxu0 %v216_v23 }
  0x71   :  { %532 = vmatpush.msrb.mxu1 %v201_v24  ;;  %575 = vmatpush.msrb.mxu3 %v155_v25 }
  0x72   :  { %555 = vmatpush.msrb.mxu2 %v154_v26  ;;  %512 = vmatpush.msrb.mxu0 %v200_v27 }
  0x73   :  { %533 = vmatpush.msrb.mxu1 %v185_v28  ;;  %576 = vmatpush.msrb.mxu3 %v139_v29 }
  0x74   :  { %556 = vmatpush.msrb.mxu2 %v138_v30  ;;  %513 = vmatpush.msrb.mxu0 %v184_v31 }
  0x75   :  { %534 = vmatpush.msrb.mxu1 %v169_v32  ;;  %577 = vmatpush.msrb.mxu3 %v123_v33 }
  0x76   :  { %557 = vmatpush.msrb.mxu2 %v122_v34  ;;  %514 = vmatpush.msrb.mxu0 %v168_v35 }
  0x77   :  { %535 = vmatpush.msrb.mxu1 %v153_v36  ;;  %578 = vmatpush.msrb.mxu3 %v107_v37 }
  0x78   :  { %558 = vmatpush.msrb.mxu2 %v106_v38  ;;  %515 = vmatpush.msrb.mxu0 %v152_v39 }
  0x79   :  { %536 = vmatpush.msrb.mxu1 %v137_v40  ;;  %579 = vmatpush.msrb.mxu3 %v91_v41 }
  0x7a   :  { %559 = vmatpush.msrb.mxu2 %v90_v42  ;;  %504 = vmatmul.f32.vlgmr.msra.gmra.mxu3 %v1064_v55 }
  0x7b   :  { %516 = vmatpush.msrb.mxu0 %v136_v43  ;;  %537 = vmatpush.msrb.mxu1 %v121_v44 }
  0x7c   :  { %580 = vmatpush.msrb.mxu3 %v75_v45  ;;  %484 = vmatmul.f32.vlgmr.msra.gmra.mxu2 %v1064_v55 }
  0x7d   :  { %517 = vmatpush.msrb.mxu0 %v120_v46  ;;  %538 = vmatpush.msrb.mxu1 %v105_v47 }
  0x7e   :  { %560 = vmatpush.msrb.mxu2 %v74_v48  ;;  %581 = vmatpush.msrb.mxu3 %v59_v49 }
  0x7f   :  { %518 = vmatpush.msrb.mxu0 %v104_v50  ;;  %539 = vmatpush.msrb.mxu1 %v89_v51 }
  0x80   :  { %561 = vmatpush.msrb.mxu2 %v58_v52  ;;  %582 = vmatpush.msrb.mxu3 %v43_v53 }
  0x81   :  { %464 = vmatmul.f32.vlgmr.msra.gmra.mxu1 %v1064_v55  ;;  %519 = vmatpush.msrb.mxu0 %v88_v54 }
  0x82   :  { %540 = vmatpush.msrb.mxu1 %v73_v56  ;;  %562 = vmatpush.msrb.mxu2 %v42_v57 }
  0x83   :  { %583 = vmatpush.msrb.mxu3 %v27_v58  ;;  %444 = vmatmul.f32.vlgmr.msra.gmra.mxu0 %v1064_v55 }
  0x84   :  { %584 = vmatmul.f32.vlgmr.msrb.gmra.mxu3 %v1064_v55  ;;  %520 = vmatpush.msrb.mxu0 %v72_v59 }
  0x85   :  { %541 = vmatpush.msrb.mxu1 %v57_v60  ;;  %563 = vmatpush.msrb.mxu2 %v26_v61 }
  0x86   :  { %564 = vmatmul.f32.vlgmr.msrb.gmra.mxu2 %v1064_v55  ;;  %521 = vmatpush.msrb.mxu0 %v56_v62 }
  0x87   :  { %542 = vmatpush.msrb.mxu1 %v41_v63 }
  0x88   :  { %522 = vmatpush.msrb.mxu0 %v40_v0 }
  0x89   :  { %543 = vmatpush.msrb.mxu1 %v25_v1 }
  0x8a   :  { %544 = vmatmul.f32.vlgmr.msrb.gmra.mxu1 %v1064_v55  ;;  %523 = vmatpush.msrb.mxu0 %v24_v2 }
  0x8b   :  { %524 = vmatmul.f32.vlgmr.msrb.gmra.mxu0 %v1064_v55 }
  0xbe   :  { %v345_v3 = vpop.f32.mrf.mxu3 }
  0xbf   :  { %657 = vtanh.f32 %v345_v3 }
  0xc2   :  { %v305_v4 = vpop.f32.mrf.mxu1  ;;  %v325_v5 = vpop.f32.mrf.mxu2 }
  0xc3   :  { %659 = vtanh.f32 %v305_v4  ;;  %v285_v6 = vpop.f32.mrf.mxu0 }
  0xc4   :  { %661 = vtanh.f32 %v325_v5 }
  0xc5   :  { %663 = vtanh.f32 %v285_v6  ;;  %v658_v7 = vpop.eup %657 }
  0xc6   :  { %v621_v8 = vrot.slane %v658_v7, 4 }
  0xc9   :  { %v660_v9 = vpop.eup %659 }
  0xca   :  { %v662_v10 = vpop.eup %661  ;;  %v620_v11 = vrot.slane %v660_v9, 4 }
  0xcb   :  { %v664_v12 = vpop.eup %663  ;;  %v630_v13 = vsel %vm628_vm0, %v662_v10, %v621_v8 }
  0xcc   :  { %v629_v14 = vsel %vm628_vm0, %v664_v12, %v620_v11  ;;  %646 = vst [vmem:[%s1527_s2 + $0x8] sm:$0x77] %v630_v13 }
  0xcd   :  { %645 = vst [vmem:[%s1527_s2] sm:$0x77] %v629_v14 }
  0xe2   :  { %v425_v55 = vpop.f32.mrf.mxu3 }
  0xe3   :  { %665 = vtanh.f32 %v425_v55 }
  0xe4   :  { %v385_v15 = vpop.f32.mrf.mxu1 }
  0xe5   :  { %667 = vtanh.f32 %v385_v15  ;;  %v405_v16 = vpop.f32.mrf.mxu2 }
  0xe6   :  { %v365_v17 = vpop.f32.mrf.mxu0  ;;  %669 = vtanh.f32 %v405_v16 }
  0xe7   :  { %671 = vtanh.f32 %v365_v17 }
  0xe9   :  { %v666_v18 = vpop.eup %665 }
  0xea   :  { %v623_v20 = vrot.slane %v666_v18, 4 }
  0xeb   :  { %v668_v19 = vpop.eup %667 }
  0xec   :  { %v670_v21 = vpop.eup %669  ;;  %v622_v22 = vrot.slane %v668_v19, 4 }
  0xed   :  { %v672_v23 = vpop.eup %671  ;;  %v632_v24 = vsel %vm628_vm0, %v670_v21, %v623_v20 }
  0xee   :  { %v631_v25 = vsel %vm628_vm0, %v672_v23, %v622_v22  ;;  %648 = vst [vmem:[%s1527_s2 + $0x18] sm:$0x77] %v632_v24 }
  0xef   :  { %647 = vst [vmem:[%s1527_s2 + $0x10] sm:$0x77] %v631_v25 }
  0xfd   :  { %v505_v27 = vpop.f32.mrf.mxu3 }
  0xfe   :  { %v465_v26 = vpop.f32.mrf.mxu1 }
  0xff   :  { %673 = vtanh.f32 %v465_v26  ;;  %v485_v28 = vpop.f32.mrf.mxu2 }
 0x100   :  { %675 = vtanh.f32 %v505_v27  ;;  %v445_v29 = vpop.f32.mrf.mxu0 }
 0x101   :  { %677 = vtanh.f32 %v485_v28 }
 0x102   :  { %679 = vtanh.f32 %v445_v29 }
 0x105   :  { %v674_v30 = vpop.eup %673 }
 0x106   :  { %v676_v31 = vpop.eup %675  ;;  %v624_v32 = vrot.slane %v674_v30, 4 }
 0x107   :  { %v678_v33 = vpop.eup %677  ;;  %v625_v34 = vrot.slane %v676_v31, 4  ;;  %v585_v35 = vpop.f32.mrf.mxu3 }
 0x108   :  { %v680_v36 = vpop.eup %679  ;;  %v545_v37 = vpop.f32.mrf.mxu1  ;;  %681 = vtanh.f32 %v585_v35 }
 0x109   :  { %v633_v38 = vsel %vm628_vm0, %v680_v36, %v624_v32  ;;  %v634_v39 = vsel %vm628_vm0, %v678_v33, %v625_v34  ;;  %683 = vtanh.f32 %v545_v37  ;;  %v525_v40 = vpop.f32.mrf.mxu0  ;;  %v565_v41 = vpop.f32.mrf.mxu2 }
 0x10a   :  { %649 = vst [vmem:[%s1527_s2 + $0x20] sm:$0x77] %v633_v38  ;;  %685 = vtanh.f32 %v525_v40 }
 0x10b   :  { %650 = vst [vmem:[%s1527_s2 + $0x28] sm:$0x77] %v634_v39  ;;  %687 = vtanh.f32 %v565_v41 }
 0x10e   :  { %v682_v42 = vpop.eup %681 }
 0x10f   :  { %v684_v43 = vpop.eup %683  ;;  %v627_v44 = vrot.slane %v682_v42, 4 }
 0x110   :  { %v686_v45 = vpop.eup %685  ;;  %v626_v46 = vrot.slane %v684_v43, 4 }
 0x111   :  { %v688_v47 = vpop.eup %687 }
 0x112   :  { %v635_v48 = vsel %vm628_vm0, %v686_v45, %v626_v46  ;;  %v636_v49 = vsel %vm628_vm0, %v688_v47, %v627_v44 }
 0x113   :  { %651 = vst [vmem:[%s1527_s2 + $0x30] sm:$0x77] %v635_v48 }
 0x114   :  { %652 = vst [vmem:[%s1527_s2 + $0x38] sm:$0x77] %v636_v49 }

</bundles_post_ra>
